<compile_context>
chip_gen: v7x
topology: tpu7x:2x2x1
jax: 0.10.0
libtpu: 0.0.40
codegen_flags: <defaults>
</compile_context>

<pallas_src>
import functools

import jax
import jax.numpy as jnp
from jax import lax
from jax.experimental import pallas as pl
from jax.experimental.pallas import tpu as pltpu

EPS = 1e-5   # PyTorch BatchNorm2d default
LANE = 128


def _round_up(x, m):
    return (x + m - 1) // m * m


def _vmem_capacity_bytes():
    """Generation-aware VMEM capacity (v5e/v6e: 128 MiB, v7x: 64 MiB)."""
    try:
        info = pltpu.get_tpu_info()
        cap = getattr(info, "vmem_capacity_bytes", None)
        if cap:
            return int(cap)
    except Exception:
        pass
    return 64 * 1024 * 1024  # conservative fallback (v7x-sized)


def _chunk_rows(bh, W, target_m=256):
    """Rows per M-chunk so the f32 accumulator (~chunk*W x cout_p) stays in vregs."""
    ch = max(1, min(bh, target_m // max(W, 1)))
    while ch > 1 and bh % ch:
        ch -= 1
    return max(ch, 1)


def _choose_bh(N, H, W, Hp, Wp, cin_p, cout_p, in_bytes, inter_bytes, budget):
    """Largest H-block that fits the VMEM budget; prefers >=8 grid steps
    (megacore pipelining depth) and >=256 output rows per tile."""
    fixed = (2 * Hp * Wp * cin_p * in_bytes          # resident input (double-buffered)
             + 2 * 9 * cin_p * cout_p * in_bytes)    # resident weights

    def fits(bh):
        ch = _chunk_rows(bh, W)
        temps = ch * W * (4 * cout_p + 3 * cin_p * in_bytes) * 2   # acc + tap slab (2x slack)
        per = (fixed
               + 2 * bh * W * cout_p * inter_bytes                 # conv output tile
               + 2 * 2 * cout_p * 4                                # stats tile
               + temps)
        return per <= budget

    cands = [b for b in range(1, H + 1) if H % b == 0 and fits(b)]
    if not cands:
        return 1
    deep = [b for b in cands if N * (H // b) >= 8] or cands
    big = [b for b in deep if b * W >= 256] or deep
    return max(big)


def _choose_row_block(R, cap):
    """Largest multiple-of-8 divisor of R that is <= cap (else the full extent)."""
    cap = min(R, max(cap, 8))
    best = None
    for b in range(8, cap + 1, 8):
        if R % b == 0:
            best = b
    return best if best is not None else R


def _conv_stats_kernel(x_ref, w_ref, conv_ref, stats_ref,
                       *, BH, CH, W, d, cin_p, cout_p):
    """3x3 dilated conv (kw folded into K) for one (1, BH, W, cout_p) tile.

    x_ref     : (1, H+2d, W+2d, cin_p)  whole padded image of batch n; its block
                index is constant along the H-block grid axis, so it is DMA'd
                once per batch and stays resident.
    w_ref     : (3, 3*cin_p, cout_p)    per-kh weights, K laid out as [kw, cin].
    conv_ref  : (1, BH, W, cout_p)      raw conv output tile (intermediate dtype).
    stats_ref : (1, 1, 2*cout_p)        [sum | sumsq] from the f32 accumulator.
    """
    i = pl.program_id(1)
    row0 = i * BH                          # first output row of this tile

    s = jnp.zeros((1, cout_p), jnp.float32)
    ss = jnp.zeros((1, cout_p), jnp.float32)
    for c in range(BH // CH):              # M-chunks: f32 acc stays in vregs
        r = row0 + c * CH
        acc = jnp.zeros((CH * W, cout_p), jnp.float32)
        for kh in range(3):
            # rows [r + kh*d, r + kh*d + CH) of the padded image feed tap row kh
            slab = x_ref[0, pl.ds(r + kh * d, CH), :, :]           # (CH, Wp, cin_p)
            taps = jnp.concatenate(
                [slab[:, kw * d:kw * d + W, :] for kw in range(3)], axis=-1)
            acc = acc + jnp.dot(taps.reshape(CH * W, 3 * cin_p), w_ref[kh],
                                preferred_element_type=jnp.float32)
        conv_ref[0, c * CH:(c + 1) * CH, :, :] = (
            acc.reshape(CH, W, cout_p).astype(conv_ref.dtype))
        s = s + jnp.sum(acc, axis=0, keepdims=True)
        ss = ss + jnp.sum(acc * acc, axis=0, keepdims=True)
    stats_ref[...] = jnp.concatenate([s, ss], axis=-1).reshape(1, 1, 2 * cout_p)


def _bn_relu_kernel(conv_ref, scale_ref, shift_ref, out_ref):
    """y = max(conv * scale + shift, 0) over a large lane-dense row block."""
    y = conv_ref[...].astype(jnp.float32) * scale_ref[...] + shift_ref[...]
    out_ref[...] = jnp.maximum(y, 0.0).astype(out_ref.dtype)


@functools.partial(jax.jit, static_argnames=("dilation", "compute_dtype"))
def irblock_forward(x_nchw, weight_oihw, gamma, beta, dilation=1,
                    compute_dtype=jnp.bfloat16, eps=EPS):
    """NCHW in / NCHW out, matching IRBlock.forward (training-mode BN stats)."""
    d = int(dilation)
    N, Cin, H, W = x_nchw.shape
    Cout = weight_oihw.shape[0]
    cin_p = _round_up(Cin, LANE)
    cout_p = _round_up(Cout, LANE)
    Hp, Wp = H + 2 * d, W + 2 * d

    f32_compute = jnp.dtype(compute_dtype) == jnp.dtype(jnp.float32)
    inter_dtype = jnp.float32 if f32_compute else jnp.bfloat16
    in_bytes = jnp.dtype(compute_dtype).itemsize
    inter_bytes = jnp.dtype(inter_dtype).itemsize

    # Input: cast to the compute dtype first (halves the layout-pass traffic on
    # the bf16 path), then NCHW->NHWC, spatial zero-pad by d, channel pad to 128.
    x = jnp.transpose(x_nchw.astype(compute_dtype), (0, 2, 3, 1))
    x = jnp.pad(x, ((0, 0), (d, d), (d, d), (0, cin_p - Cin)))

    # Weights: (O, I, 3, 3) -> (3 kh, 3*cin_p, cout_p), with kw folded into K.
    w = jnp.transpose(weight_oihw.astype(compute_dtype), (2, 3, 1, 0))   # (3,3,I,O)
    w = jnp.pad(w, ((0, 0), (0, 0), (0, cin_p - Cin), (0, cout_p - Cout)))
    w = w.reshape(3, 3 * cin_p, cout_p)

    vmem_cap = _vmem_capacity_bytes()
    budget = int(vmem_cap * 0.45)
    vmem_limit = min(int(vmem_cap * 3 // 4), 100 * 1024 * 1024)

    BH = _choose_bh(N, H, W, Hp, Wp, cin_p, cout_p, in_bytes, inter_bytes, budget)
    CH = _chunk_rows(BH, W)
    num_hblk = H // BH
    grid = (N, num_hblk)

    cparams = pltpu.CompilerParams(
        dimension_semantics=("parallel", "parallel"),
        vmem_limit_bytes=vmem_limit)

    # Pass 1: conv + per-tile BN partial sums (from the f32 accumulator).
    conv_out, stats = pl.pallas_call(
        functools.partial(_conv_stats_kernel, BH=BH, CH=CH, W=W, d=d,
                          cin_p=cin_p, cout_p=cout_p),
        grid=grid,
        in_specs=[
            pl.BlockSpec((1, Hp, Wp, cin_p), lambda n, i: (n, 0, 0, 0)),
            pl.BlockSpec((3, 3 * cin_p, cout_p), lambda n, i: (0, 0, 0)),
        ],
        out_specs=(
            pl.BlockSpec((1, BH, W, cout_p), lambda n, i: (n, i, 0, 0)),
            pl.BlockSpec((1, 1, 2 * cout_p),
                         lambda n, i: (n * num_hblk + i, 0, 0)),
        ),
        out_shape=(
            jax.ShapeDtypeStruct((N, H, W, cout_p), inter_dtype),
            jax.ShapeDtypeStruct((N * num_hblk, 1, 2 * cout_p), jnp.float32),
        ),
        compiler_params=cparams,
    )(x, w)

    # Tiny reduction of the partials -> batch statistics (XLA, negligible).
    cnt = jnp.float32(N * H * W)
    ssum = jnp.sum(stats[:, 0, :], axis=0)               # (2*cout_p,)
    mean = ssum[:cout_p] / cnt
    var = ssum[cout_p:] / cnt - mean * mean
    var = jnp.maximum(var, 0.0)                          # E[x^2]-mean^2 guard
    inv = lax.rsqrt(var + eps)
    gamma_p = jnp.pad(gamma.astype(jnp.float32), (0, cout_p - Cout),
                      constant_values=1.0)
    beta_p = jnp.pad(beta.astype(jnp.float32), (0, cout_p - Cout))
    scale = (gamma_p * inv).reshape(1, cout_p)
    shift = (beta_p - mean * gamma_p * inv).reshape(1, cout_p)

    # Pass 2: BN + ReLU over a flattened, lane-dense view with large tiles.
    R = N * H * W
    conv_flat = conv_out.reshape(R, cout_p)              # contiguous merge: free
    per_row = cout_p * (inter_bytes + 4) * 2             # in + out, double-buffered
    RB = _choose_row_block(R, cap=min(8192, max(512, budget // max(per_row, 1))))
    out_flat = pl.pallas_call(
        _bn_relu_kernel,
        grid=(R // RB,),
        in_specs=[pl.BlockSpec((RB, cout_p), lambda r: (r, 0)),
                  pl.BlockSpec((1, cout_p), lambda r: (0, 0)),
                  pl.BlockSpec((1, cout_p), lambda r: (0, 0))],
        out_specs=pl.BlockSpec((RB, cout_p), lambda r: (r, 0)),
        out_shape=jax.ShapeDtypeStruct((R, cout_p), jnp.float32),
        compiler_params=pltpu.CompilerParams(
            dimension_semantics=("parallel",),
            vmem_limit_bytes=vmem_limit),
    )(conv_flat, scale, shift)

    out = out_flat.reshape(N, H, W, cout_p)[..., :Cout]
    return jnp.transpose(out, (0, 3, 1, 2))              # back to NCHW


def irblock_ref(x_nchw, weight_oihw, gamma, beta, dilation=1, eps=EPS):
    """Pure-JAX reference (matches PyTorch training-mode forward)."""
    d = int(dilation)
    out = lax.conv_general_dilated(
        x_nchw.astype(jnp.float32), weight_oihw.astype(jnp.float32),
        window_strides=(1, 1), padding=((d, d), (d, d)),
        rhs_dilation=(d, d),
        dimension_numbers=("NCHW", "OIHW", "NCHW"))
    mean = out.mean(axis=(0, 2, 3), keepdims=True)
    var = ((out - mean) ** 2).mean(axis=(0, 2, 3), keepdims=True)
    y = (out - mean) / jnp.sqrt(var + eps)
    y = y * gamma.reshape(1, -1, 1, 1) + beta.reshape(1, -1, 1, 1)
    return jnp.maximum(y, 0.0)


if __name__ == "__main__":
    # Small shapes consistent with the module (in_c == out_c, 3x3 conv).
    N, Cin, Cout, H, W = 2, 4, 4, 16, 16

    key = jax.random.PRNGKey(0)
    k1, k2, k3, k4 = jax.random.split(key, 4)
    x = jax.random.normal(k1, (N, Cin, H, W), jnp.float32)
    weight = 0.1 * jax.random.normal(k2, (Cout, Cin, 3, 3), jnp.float32)  # no bias
    gamma = 1.0 + 0.1 * jax.random.normal(k3, (Cout,), jnp.float32)
    beta = 0.1 * jax.random.normal(k4, (Cout,), jnp.float32)

    # f32 compute path (f32 intermediate), dilation 1 and 2; tolerance allows
    # the MXU's multi-pass f32 matmul behaviour.
    for dil in (1, 2):
        out = jax.block_until_ready(
            irblock_forward(x, weight, gamma, beta, dilation=dil,
                            compute_dtype=jnp.float32))
        ref = irblock_ref(x, weight, gamma, beta, dilation=dil)
        assert out.shape == ref.shape == (N, Cout, H, W)
        err = float(jnp.max(jnp.abs(out - ref)))
        assert err < 2e-2, f"f32 path, dilation={dil}: max abs err {err}"

    # bf16 MXU path (default): bf16 inputs + bf16 conv intermediate, so the
    # tolerance covers two bf16 roundings of O(1) post-BN values.
    out_bf16 = jax.block_until_ready(
        irblock_forward(x, weight, gamma, beta, dilation=1,
                        compute_dtype=jnp.bfloat16))
    ref = irblock_ref(x, weight, gamma, beta, dilation=1)
    err = float(jnp.max(jnp.abs(out_bf16 - ref)))
    assert err < 1e-1, f"bf16 path: max abs err {err}"

    print("KERNEL_OK")
</pallas_src>

<mosaic_0001>
module attributes {stable_mosaic.version = 11 : i64} {
  func.func @_bn_relu_kernel(%arg0: i32, %arg1: memref<512x128xf32, #tpu.memory_space<vmem>>, %arg2: memref<1x128xf32, #tpu.memory_space<vmem>>, %arg3: memref<1x128xf32, #tpu.memory_space<vmem>>, %arg4: memref<512x128xf32, #tpu.memory_space<vmem>>) attributes {dimension_semantics = [#tpu.dimension_semantics<parallel>], iteration_bounds = array<i64: 1>, scalar_prefetch = 0 : i64, scratch_operands = 0 : i64, tpu.core_type = #tpu.core_type<tc>, window_params = [{transform_indices = @transform_0, window_bounds = array<i64: 512, 128>}, {pipeline_mode = #tpu.pipeline_mode<synchronous>, transform_indices = @transform_1, window_bounds = array<i64: 1, 128>}, {pipeline_mode = #tpu.pipeline_mode<synchronous>, transform_indices = @transform_2, window_bounds = array<i64: 1, 128>}, {transform_indices = @transform_3, window_bounds = array<i64: 512, 128>}]} {
    %c0 = arith.constant 0 : index
    %c0_0 = arith.constant 0 : index
    %0 = vector.load %arg1[%c0, %c0_0] : memref<512x128xf32, #tpu.memory_space<vmem>>, vector<512x128xf32>
    %c0_1 = arith.constant 0 : index
    %c0_2 = arith.constant 0 : index
    %1 = vector.load %arg2[%c0_1, %c0_2] : memref<1x128xf32, #tpu.memory_space<vmem>>, vector<1x128xf32>
    %2 = vector.broadcast %1 : vector<1x128xf32> to vector<512x128xf32>
    %3 = arith.mulf %0, %2 : vector<512x128xf32>
    %c0_3 = arith.constant 0 : index
    %c0_4 = arith.constant 0 : index
    %4 = vector.load %arg3[%c0_3, %c0_4] : memref<1x128xf32, #tpu.memory_space<vmem>>, vector<1x128xf32>
    %5 = vector.broadcast %4 : vector<1x128xf32> to vector<512x128xf32>
    %6 = arith.addf %3, %5 : vector<512x128xf32>
    %cst = arith.constant 0.000000e+00 : f32
    %7 = vector.broadcast %cst : f32 to vector<512x128xf32>
    %8 = arith.maximumf %6, %7 : vector<512x128xf32>
    %c0_5 = arith.constant 0 : index
    %c0_6 = arith.constant 0 : index
    %9 = vector.load %arg4[%c0_5, %c0_6] : memref<512x128xf32, #tpu.memory_space<vmem>>, vector<512x128xf32>
    tpu.vector_store %arg4[%c0_5, %c0_6], %8 {strides = array<i32>} : memref<512x128xf32, #tpu.memory_space<vmem>>, vector<512x128xf32>,
    return
  }
  func.func @transform_0(%arg0: i32) -> (i32, i32) {
    %c0_i32 = arith.constant 0 : i32
    %c0_i32_0 = arith.constant 0 : i32
    return %arg0, %c0_i32 : i32, i32
  }
  func.func @transform_1(%arg0: i32) -> (i32, i32) {
    %c0_i32 = arith.constant 0 : i32
    %c0_i32_0 = arith.constant 0 : i32
    %c0_i32_1 = arith.constant 0 : i32
    return %c0_i32, %c0_i32_0 : i32, i32
  }
  func.func @transform_2(%arg0: i32) -> (i32, i32) {
    %c0_i32 = arith.constant 0 : i32
    %c0_i32_0 = arith.constant 0 : i32
    %c0_i32_1 = arith.constant 0 : i32
    return %c0_i32, %c0_i32_0 : i32, i32
  }
  func.func @transform_3(%arg0: i32) -> (i32, i32) {
    %c0_i32 = arith.constant 0 : i32
    %c0_i32_0 = arith.constant 0 : i32
    return %arg0, %c0_i32 : i32, i32
  }
}

module attributes {stable_mosaic.version = 11 : i64} {
  func.func @_conv_stats_kernel(%arg0: i32, %arg1: i32, %arg2: memref<1x18x18x128xf32, #tpu.memory_space<vmem>>, %arg3: memref<3x384x128xf32, #tpu.memory_space<vmem>>, %arg4: memref<1x4x16x128xf32, #tpu.memory_space<vmem>>, %arg5: memref<1x1x256xf32, #tpu.memory_space<vmem>>) attributes {dimension_semantics = [#tpu.dimension_semantics<parallel>, #tpu.dimension_semantics<parallel>], iteration_bounds = array<i64: 2, 4>, scalar_prefetch = 0 : i64, scratch_operands = 0 : i64, tpu.core_type = #tpu.core_type<tc>, window_params = [{transform_indices = @transform_0, window_bounds = array<i64: 1, 18, 18, 128>}, {pipeline_mode = #tpu.pipeline_mode<synchronous>, transform_indices = @transform_1, window_bounds = array<i64: 3, 384, 128>}, {transform_indices = @transform_2, window_bounds = array<i64: 1, 4, 16, 128>}, {transform_indices = @transform_3, window_bounds = array<i64: 1, 1, 256>}]} {
    %c4_i32 = arith.constant 4 : i32
    %0 = arith.muli %arg1, %c4_i32 : i32
    %cst = arith.constant 0.000000e+00 : f32
    %1 = vector.broadcast %cst : f32 to vector<1x128xf32>
    %cst_0 = arith.constant 0.000000e+00 : f32
    %2 = vector.broadcast %cst_0 : f32 to vector<1x128xf32>
    %c0_i32 = arith.constant 0 : i32
    %3 = arith.addi %0, %c0_i32 : i32
    %cst_1 = arith.constant 0.000000e+00 : f32
    %4 = vector.broadcast %cst_1 : f32 to vector<64x128xf32>
    %c0_i32_2 = arith.constant 0 : i32
    %5 = arith.addi %3, %c0_i32_2 : i32
    %c0 = arith.constant 0 : index
    %6 = arith.index_cast %5 : i32 to index
    %c0_3 = arith.constant 0 : index
    %c0_4 = arith.constant 0 : index
    %7 = vector.load %arg2[%c0, %6, %c0_3, %c0_4] : memref<1x18x18x128xf32, #tpu.memory_space<vmem>>, vector<1x4x18x128xf32>
    %8 = vector.shape_cast %7 : vector<1x4x18x128xf32> to vector<4x18x128xf32>
    %9 = vector.extract_strided_slice %8 {offsets = [0, 0, 0], sizes = [4, 16, 128], strides = [1, 1, 1]} : vector<4x18x128xf32> to vector<4x16x128xf32>
    %10 = vector.extract_strided_slice %8 {offsets = [0, 1, 0], sizes = [4, 16, 128], strides = [1, 1, 1]} : vector<4x18x128xf32> to vector<4x16x128xf32>
    %11 = vector.extract_strided_slice %8 {offsets = [0, 2, 0], sizes = [4, 16, 128], strides = [1, 1, 1]} : vector<4x18x128xf32> to vector<4x16x128xf32>
    %12 = tpu.concatenate %9, %10, %11 in 2 : vector<4x16x128xf32>, vector<4x16x128xf32>, vector<4x16x128xf32> -> vector<4x16x384xf32>
    %13 = vector.shape_cast %12 : vector<4x16x384xf32> to vector<64x384xf32>
    %c0_5 = arith.constant 0 : index
    %c0_6 = arith.constant 0 : index
    %c0_7 = arith.constant 0 : index
    %14 = vector.load %arg3[%c0_5, %c0_6, %c0_7] : memref<3x384x128xf32, #tpu.memory_space<vmem>>, vector<1x384x128xf32>
    %15 = vector.shape_cast %14 : vector<1x384x128xf32> to vector<384x128xf32>
    %cst_8 = arith.constant dense<0.000000e+00> : vector<64x128xf32>
    %16 = tpu.matmul %13, %15, %cst_8 {dimension_numbers = #tpu.dot_dimension_numbers<[1], [0], [0], [1], [0, 0, 1, 1], [], []>} : vector<64x384xf32>, vector<384x128xf32>, vector<64x128xf32> -> vector<64x128xf32>
    %17 = arith.addf %4, %16 : vector<64x128xf32>
    %c1_i32 = arith.constant 1 : i32
    %18 = arith.addi %3, %c1_i32 : i32
    %c0_9 = arith.constant 0 : index
    %19 = arith.index_cast %18 : i32 to index
    %c0_10 = arith.constant 0 : index
    %c0_11 = arith.constant 0 : index
    %20 = vector.load %arg2[%c0_9, %19, %c0_10, %c0_11] : memref<1x18x18x128xf32, #tpu.memory_space<vmem>>, vector<1x4x18x128xf32>
    %21 = vector.shape_cast %20 : vector<1x4x18x128xf32> to vector<4x18x128xf32>
    %22 = vector.extract_strided_slice %21 {offsets = [0, 0, 0], sizes = [4, 16, 128], strides = [1, 1, 1]} : vector<4x18x128xf32> to vector<4x16x128xf32>
    %23 = vector.extract_strided_slice %21 {offsets = [0, 1, 0], sizes = [4, 16, 128], strides = [1, 1, 1]} : vector<4x18x128xf32> to vector<4x16x128xf32>
    %24 = vector.extract_strided_slice %21 {offsets = [0, 2, 0], sizes = [4, 16, 128], strides = [1, 1, 1]} : vector<4x18x128xf32> to vector<4x16x128xf32>
    %25 = tpu.concatenate %22, %23, %24 in 2 : vector<4x16x128xf32>, vector<4x16x128xf32>, vector<4x16x128xf32> -> vector<4x16x384xf32>
    %26 = vector.shape_cast %25 : vector<4x16x384xf32> to vector<64x384xf32>
    %c1 = arith.constant 1 : index
    %c0_12 = arith.constant 0 : index
    %c0_13 = arith.constant 0 : index
    %27 = vector.load %arg3[%c1, %c0_12, %c0_13] : memref<3x384x128xf32, #tpu.memory_space<vmem>>, vector<1x384x128xf32>
    %28 = vector.shape_cast %27 : vector<1x384x128xf32> to vector<384x128xf32>
    %cst_14 = arith.constant dense<0.000000e+00> : vector<64x128xf32>
    %29 = tpu.matmul %26, %28, %cst_14 {dimension_numbers = #tpu.dot_dimension_numbers<[1], [0], [0], [1], [0, 0, 1, 1], [], []>} : vector<64x384xf32>, vector<384x128xf32>, vector<64x128xf32> -> vector<64x128xf32>
    %30 = arith.addf %17, %29 : vector<64x128xf32>
    %c2_i32 = arith.constant 2 : i32
    %31 = arith.addi %3, %c2_i32 : i32
    %c0_15 = arith.constant 0 : index
    %32 = arith.index_cast %31 : i32 to index
    %c0_16 = arith.constant 0 : index
    %c0_17 = arith.constant 0 : index
    %33 = vector.load %arg2[%c0_15, %32, %c0_16, %c0_17] : memref<1x18x18x128xf32, #tpu.memory_space<vmem>>, vector<1x4x18x128xf32>
    %34 = vector.shape_cast %33 : vector<1x4x18x128xf32> to vector<4x18x128xf32>
    %35 = vector.extract_strided_slice %34 {offsets = [0, 0, 0], sizes = [4, 16, 128], strides = [1, 1, 1]} : vector<4x18x128xf32> to vector<4x16x128xf32>
    %36 = vector.extract_strided_slice %34 {offsets = [0, 1, 0], sizes = [4, 16, 128], strides = [1, 1, 1]} : vector<4x18x128xf32> to vector<4x16x128xf32>
    %37 = vector.extract_strided_slice %34 {offsets = [0, 2, 0], sizes = [4, 16, 128], strides = [1, 1, 1]} : vector<4x18x128xf32> to vector<4x16x128xf32>
    %38 = tpu.concatenate %35, %36, %37 in 2 : vector<4x16x128xf32>, vector<4x16x128xf32>, vector<4x16x128xf32> -> vector<4x16x384xf32>
    %39 = vector.shape_cast %38 : vector<4x16x384xf32> to vector<64x384xf32>
    %c2 = arith.constant 2 : index
    %c0_18 = arith.constant 0 : index
    %c0_19 = arith.constant 0 : index
    %40 = vector.load %arg3[%c2, %c0_18, %c0_19] : memref<3x384x128xf32, #tpu.memory_space<vmem>>, vector<1x384x128xf32>
    %41 = vector.shape_cast %40 : vector<1x384x128xf32> to vector<384x128xf32>
    %cst_20 = arith.constant dense<0.000000e+00> : vector<64x128xf32>
    %42 = tpu.matmul %39, %41, %cst_20 {dimension_numbers = #tpu.dot_dimension_numbers<[1], [0], [0], [1], [0, 0, 1, 1], [], []>} : vector<64x384xf32>, vector<384x128xf32>, vector<64x128xf32> -> vector<64x128xf32>
    %43 = arith.addf %30, %42 : vector<64x128xf32>
    %44 = vector.shape_cast %43 : vector<64x128xf32> to vector<4x16x128xf32>
    %c0_21 = arith.constant 0 : index
    %c0_22 = arith.constant 0 : index
    %c0_23 = arith.constant 0 : index
    %c0_24 = arith.constant 0 : index
    %45 = vector.load %arg4[%c0_21, %c0_22, %c0_23, %c0_24] : memref<1x4x16x128xf32, #tpu.memory_space<vmem>>, vector<1x4x16x128xf32>
    %46 = vector.shape_cast %45 : vector<1x4x16x128xf32> to vector<4x16x128xf32>
    %47 = vector.shape_cast %44 : vector<4x16x128xf32> to vector<1x4x16x128xf32>
    tpu.vector_store %arg4[%c0_21, %c0_22, %c0_23, %c0_24], %47 {strides = array<i32>} : memref<1x4x16x128xf32, #tpu.memory_space<vmem>>, vector<1x4x16x128xf32>,
    %cst_25 = arith.constant dense<0.000000e+00> : vector<128xf32>
    %48 = vector.multi_reduction <add>, %43, %cst_25 [0] : vector<64x128xf32> to vector<128xf32>
    %49 = vector.shape_cast %48 : vector<128xf32> to vector<1x128xf32>
    %50 = arith.addf %1, %49 : vector<1x128xf32>
    %51 = arith.mulf %43, %43 : vector<64x128xf32>
    %cst_26 = arith.constant dense<0.000000e+00> : vector<128xf32>
    %52 = vector.multi_reduction <add>, %51, %cst_26 [0] : vector<64x128xf32> to vector<128xf32>
    %53 = vector.shape_cast %52 : vector<128xf32> to vector<1x128xf32>
    %54 = arith.addf %2, %53 : vector<1x128xf32>
    %55 = tpu.concatenate %50, %54 in 1 : vector<1x128xf32>, vector<1x128xf32> -> vector<1x256xf32>
    %56 = vector.shape_cast %55 : vector<1x256xf32> to vector<1x1x256xf32>
    %c0_27 = arith.constant 0 : index
    %c0_28 = arith.constant 0 : index
    %c0_29 = arith.constant 0 : index
    %57 = vector.load %arg5[%c0_27, %c0_28, %c0_29] : memref<1x1x256xf32, #tpu.memory_space<vmem>>, vector<1x1x256xf32>
    tpu.vector_store %arg5[%c0_27, %c0_28, %c0_29], %56 {strides = array<i32>} : memref<1x1x256xf32, #tpu.memory_space<vmem>>, vector<1x1x256xf32>,
    return
  }
  func.func @transform_0(%arg0: i32, %arg1: i32) -> (i32, i32, i32, i32) {
    %c0_i32 = arith.constant 0 : i32
    %c0_i32_0 = arith.constant 0 : i32
    %c0_i32_1 = arith.constant 0 : i32
    %c0_i32_2 = arith.constant 0 : i32
    return %arg0, %c0_i32, %c0_i32_0, %c0_i32_1 : i32, i32, i32, i32
  }
  func.func @transform_1(%arg0: i32, %arg1: i32) -> (i32, i32, i32) {
    %c0_i32 = arith.constant 0 : i32
    %c0_i32_0 = arith.constant 0 : i32
    %c0_i32_1 = arith.constant 0 : i32
    %c0_i32_2 = arith.constant 0 : i32
    return %c0_i32, %c0_i32_0, %c0_i32_1 : i32, i32, i32
  }
  func.func @transform_2(%arg0: i32, %arg1: i32) -> (i32, i32, i32, i32) {
    %c0_i32 = arith.constant 0 : i32
    %c0_i32_0 = arith.constant 0 : i32
    %c0_i32_1 = arith.constant 0 : i32
    return %arg0, %arg1, %c0_i32, %c0_i32_0 : i32, i32, i32, i32
  }
  func.func @transform_3(%arg0: i32, %arg1: i32) -> (i32, i32, i32) {
    %c4_i32 = arith.constant 4 : i32
    %0 = arith.muli %arg0, %c4_i32 : i32
    %1 = arith.addi %0, %arg1 : i32
    %c0_i32 = arith.constant 0 : i32
    %c0_i32_0 = arith.constant 0 : i32
    %c0_i32_1 = arith.constant 0 : i32
    return %1, %c0_i32, %c0_i32_0 : i32, i32, i32
  }
}

</mosaic_0001>

<bundles_post_ra>
// kernel: irblock_forward.3
= control target key start
LH: loop header
LB: loop body
LE: loop exit
PB: predicated region body
PF: predicated region fallthrough
CT: control target
= control target key end

     0   :  { %s896_s0 = inlined_call_operand.vmem [shape: f32[512,128], index: 0, kind: input, shape index: {}]   ;;  %s897_s1 = inlined_call_operand.vmem [shape: f32[1,128], index: 1, kind: input, shape index: {}]   ;;  %s898_s2 = inlined_call_operand.vmem [shape: f32[1,128], index: 2, kind: input, shape index: {}]   ;;  %s899_s3 = inlined_call_operand.vmem [shape: f32[512,128], index: 3, kind: output, shape index: {}]  }
   0x1   :  { %v14_v0 = vld [vmem:[%s896_s0] sm:$0xff]  ;;  %v15_v4 = vld [vmem:[%s896_s0 + $0x8] sm:$0xff]  ;;  %v16_v5 = vld [vmem:[%s896_s0 + $0x10] sm:$0xff] }
   0x2   :  { %v380_v1 = vld [vmem:[%s897_s1] ss:$0 sm:$0xff]  ;;  %v17_v6 = vld [vmem:[%s896_s0 + $0x18] sm:$0xff]  ;;  %v19_v11 = vld [vmem:[%s896_s0 + $0x28] sm:$0xff] }
   0x3   :  { %v385_v2 = vld [vmem:[%s898_s2] ss:$0 sm:$0xff]  ;;  %v85_v3 = vmul.f32 %v380_v1, %v14_v0  ;;  %v86_v7 = vmul.f32 %v380_v1, %v15_v4  ;;  %v87_v8 = vmul.f32 %v380_v1, %v16_v5  ;;  %v88_v9 = vmul.f32 %v380_v1, %v17_v6  ;;  %v20_v12 = vld [vmem:[%s896_s0 + $0x30] sm:$0xff]  ;;  %v21_v17 = vld [vmem:[%s896_s0 + $0x38] sm:$0xff] }
   0x4   :  { %v18_v10 = vld [vmem:[%s896_s0 + $0x20] sm:$0xff]  ;;  %v90_v15 = vmul.f32 %v380_v1, %v19_v11  ;;  %v91_v16 = vmul.f32 %v380_v1, %v20_v12  ;;  %v92_v21 = vmul.f32 %v380_v1, %v21_v17  ;;  %v23_v27 = vld [vmem:[%s896_s0 + $0x48] sm:$0xff]  ;;  %v24_v28 = vld [vmem:[%s896_s0 + $0x50] sm:$0xff] }
   0x5   :  { %v156_v13 = vadd.f32 %v385_v2, %v85_v3  ;;  %v89_v14 = vmul.f32 %v380_v1, %v18_v10  ;;  %v157_v18 = vadd.f32 %v385_v2, %v86_v7  ;;  %v158_v19 = vadd.f32 %v385_v2, %v87_v8  ;;  %v22_v22 = vld [vmem:[%s896_s0 + $0x40] sm:$0xff]  ;;  %v25_v29 = vld [vmem:[%s896_s0 + $0x58] sm:$0xff]  ;;  %v27_v35 = vld [vmem:[%s896_s0 + $0x68] sm:$0xff] }
   0x6   :  { %v159_v20 = vadd.f32 %v385_v2, %v88_v9  ;;  %v161_v25 = vadd.f32 %v385_v2, %v90_v15  ;;  %v162_v26 = vadd.f32 %v385_v2, %v91_v16  ;;  %v163_v33 = vadd.f32 %v385_v2, %v92_v21  ;;  %v26_v34 = vld [vmem:[%s896_s0 + $0x60] sm:$0xff]  ;;  %v28_v36 = vld [vmem:[%s896_s0 + $0x70] sm:$0xff]  ;;  %v29_v41 = vld [vmem:[%s896_s0 + $0x78] sm:$0xff] }
   0x7   :  { %v220_v23 = vmax.f32 %v156_v13, 0.0  ;;  %v160_v24 = vadd.f32 %v385_v2, %v89_v14  ;;  %v221_v30 = vmax.f32 %v157_v18, 0.0  ;;  %v222_v31 = vmax.f32 %v158_v19, 0.0  ;;  %v30_v54 = vld [vmem:[%s896_s0 + $0x80] sm:$0xff]  ;;  %v31_v59 = vld [vmem:[%s896_s0 + $0x88] sm:$0xff]  ;;  %v32_v60 = vld [vmem:[%s896_s0 + $0x90] sm:$0xff] }
   0x8   :  { %v223_v32 = vmax.f32 %v159_v20, 0.0  ;;  %v225_v38 = vmax.f32 %v161_v25, 0.0  ;;  %v226_v39 = vmax.f32 %v162_v26, 0.0  ;;  %v93_v40 = vmul.f32 %v380_v1, %v22_v22  ;;  %v33_v61 = vld [vmem:[%s896_s0 + $0x98] sm:$0xff]  ;;  %v34_v4 = vld [vmem:[%s896_s0 + $0xa0] sm:$0xff]  ;;  %v35_v5 = vld [vmem:[%s896_s0 + $0xa8] sm:$0xff] }
   0x9   :  { %284 = vst [vmem:[%s899_s3] sm:$0xff] %v220_v23  ;;  %v224_v37 = vmax.f32 %v160_v24, 0.0  ;;  %285 = vst [vmem:[%s899_s3 + $0x8] sm:$0xff] %v221_v30  ;;  %v227_v42 = vmax.f32 %v163_v33, 0.0  ;;  %v94_v43 = vmul.f32 %v380_v1, %v23_v27  ;;  %v95_v44 = vmul.f32 %v380_v1, %v24_v28  ;;  %v36_v6 = vld [vmem:[%s896_s0 + $0xb0] sm:$0xff]  ;;  %v37_v11 = vld [vmem:[%s896_s0 + $0xb8] sm:$0xff] }
   0xa   :  { %286 = vst [vmem:[%s899_s3 + $0x10] sm:$0xff] %v222_v31  ;;  %287 = vst [vmem:[%s899_s3 + $0x18] sm:$0xff] %v223_v32  ;;  %v96_v45 = vmul.f32 %v380_v1, %v25_v29  ;;  %v164_v46 = vadd.f32 %v385_v2, %v93_v40  ;;  %v97_v47 = vmul.f32 %v380_v1, %v26_v34  ;;  %v38_v24 = vld [vmem:[%s896_s0 + $0xc0] sm:$0xff]  ;;  %v39_v29 = vld [vmem:[%s896_s0 + $0xc8] sm:$0xff] }
   0xb   :  { %288 = vst [vmem:[%s899_s3 + $0x20] sm:$0xff] %v224_v37  ;;  %289 = vst [vmem:[%s899_s3 + $0x28] sm:$0xff] %v225_v38  ;;  %v98_v48 = vmul.f32 %v380_v1, %v27_v35  ;;  %v99_v49 = vmul.f32 %v380_v1, %v28_v36  ;;  %v165_v50 = vadd.f32 %v385_v2, %v94_v43  ;;  %v40_v30 = vld [vmem:[%s896_s0 + $0xd0] sm:$0xff]  ;;  %v41_v31 = vld [vmem:[%s896_s0 + $0xd8] sm:$0xff] }
   0xc   :  { %290 = vst [vmem:[%s899_s3 + $0x30] sm:$0xff] %v226_v39  ;;  %291 = vst [vmem:[%s899_s3 + $0x38] sm:$0xff] %v227_v42  ;;  %v166_v51 = vadd.f32 %v385_v2, %v95_v44  ;;  %v167_v52 = vadd.f32 %v385_v2, %v96_v45  ;;  %v100_v53 = vmul.f32 %v380_v1, %v29_v41  ;;  %v228_v55 = vmax.f32 %v164_v46, 0.0  ;;  %v42_v36 = vld [vmem:[%s896_s0 + $0xe0] sm:$0xff]  ;;  %v43_v37 = vld [vmem:[%s896_s0 + $0xe8] sm:$0xff] }
   0xd   :  { %v168_v56 = vadd.f32 %v385_v2, %v97_v47  ;;  %v169_v57 = vadd.f32 %v385_v2, %v98_v48  ;;  %v170_v58 = vadd.f32 %v385_v2, %v99_v49  ;;  %v229_v62 = vmax.f32 %v165_v50, 0.0  ;;  %v44_v38 = vld [vmem:[%s896_s0 + $0xf0] sm:$0xff]  ;;  %v45_v43 = vld [vmem:[%s896_s0 + $0xf8] sm:$0xff] }
   0xe   :  { %v230_v63 = vmax.f32 %v166_v51, 0.0  ;;  %v231_v0 = vmax.f32 %v167_v52, 0.0  ;;  %v171_v3 = vadd.f32 %v385_v2, %v100_v53  ;;  %292 = vst [vmem:[%s899_s3 + $0x40] sm:$0xff] %v228_v55  ;;  %v101_v10 = vmul.f32 %v380_v1, %v30_v54 }
   0xf   :  { %v232_v7 = vmax.f32 %v168_v56, 0.0  ;;  %v233_v8 = vmax.f32 %v169_v57, 0.0  ;;  %v234_v9 = vmax.f32 %v170_v58, 0.0  ;;  %293 = vst [vmem:[%s899_s3 + $0x48] sm:$0xff] %v229_v62  ;;  %v102_v13 = vmul.f32 %v380_v1, %v31_v59  ;;  %v46_v56 = vld [vmem:[%s896_s0 + $0x100] sm:$0xff]  ;;  %v48_v62 = vld [vmem:[%s896_s0 + $0x110] sm:$0xff] }
  0x10   :  { %294 = vst [vmem:[%s899_s3 + $0x50] sm:$0xff] %v230_v63  ;;  %295 = vst [vmem:[%s899_s3 + $0x58] sm:$0xff] %v231_v0  ;;  %v235_v12 = vmax.f32 %v171_v3, 0.0  ;;  %v103_v14 = vmul.f32 %v380_v1, %v32_v60  ;;  %v104_v15 = vmul.f32 %v380_v1, %v33_v61  ;;  %v172_v16 = vadd.f32 %v385_v2, %v101_v10  ;;  %v47_v61 = vld [vmem:[%s896_s0 + $0x108] sm:$0xff]  ;;  %v49_v63 = vld [vmem:[%s896_s0 + $0x118] sm:$0xff] }
  0x11   :  { %296 = vst [vmem:[%s899_s3 + $0x60] sm:$0xff] %v232_v7  ;;  %297 = vst [vmem:[%s899_s3 + $0x68] sm:$0xff] %v233_v8  ;;  %v105_v17 = vmul.f32 %v380_v1, %v34_v4  ;;  %v106_v18 = vmul.f32 %v380_v1, %v35_v5  ;;  %v107_v19 = vmul.f32 %v380_v1, %v36_v6  ;;  %v50_v6 = vld [vmem:[%s896_s0 + $0x120] sm:$0xff]  ;;  %v51_v7 = vld [vmem:[%s896_s0 + $0x128] sm:$0xff] }
  0x12   :  { %298 = vst [vmem:[%s899_s3 + $0x70] sm:$0xff] %v234_v9  ;;  %299 = vst [vmem:[%s899_s3 + $0x78] sm:$0xff] %v235_v12  ;;  %v173_v20 = vadd.f32 %v385_v2, %v102_v13  ;;  %v174_v21 = vadd.f32 %v385_v2, %v103_v14  ;;  %v175_v22 = vadd.f32 %v385_v2, %v104_v15  ;;  %v236_v25 = vmax.f32 %v172_v16, 0.0  ;;  %v52_v8 = vld [vmem:[%s896_s0 + $0x130] sm:$0xff]  ;;  %v53_v13 = vld [vmem:[%s896_s0 + $0x138] sm:$0xff] }
  0x13   :  { %v108_v23 = vmul.f32 %v380_v1, %v37_v11  ;;  %v176_v26 = vadd.f32 %v385_v2, %v105_v17  ;;  %v177_v27 = vadd.f32 %v385_v2, %v106_v18  ;;  %v178_v28 = vadd.f32 %v385_v2, %v107_v19 }
  0x14   :  { %v237_v32 = vmax.f32 %v173_v20, 0.0  ;;  %v238_v33 = vmax.f32 %v174_v21, 0.0  ;;  %v239_v34 = vmax.f32 %v175_v22, 0.0  ;;  %300 = vst [vmem:[%s899_s3 + $0x80] sm:$0xff] %v236_v25  ;;  %v109_v42 = vmul.f32 %v380_v1, %v38_v24 }
  0x15   :  { %v179_v35 = vadd.f32 %v385_v2, %v108_v23  ;;  %v240_v39 = vmax.f32 %v176_v26, 0.0  ;;  %v241_v40 = vmax.f32 %v177_v27, 0.0  ;;  %v242_v41 = vmax.f32 %v178_v28, 0.0  ;;  %v54_v26 = vld [vmem:[%s896_s0 + $0x140] sm:$0xff] }
  0x16   :  { %301 = vst [vmem:[%s899_s3 + $0x88] sm:$0xff] %v237_v32  ;;  %302 = vst [vmem:[%s899_s3 + $0x90] sm:$0xff] %v238_v33  ;;  %v110_v45 = vmul.f32 %v380_v1, %v39_v29  ;;  %v111_v46 = vmul.f32 %v380_v1, %v40_v30  ;;  %v112_v47 = vmul.f32 %v380_v1, %v41_v31  ;;  %v55_v31 = vld [vmem:[%s896_s0 + $0x148] sm:$0xff]  ;;  %v56_v32 = vld [vmem:[%s896_s0 + $0x150] sm:$0xff] }
  0x17   :  { %303 = vst [vmem:[%s899_s3 + $0x98] sm:$0xff] %v239_v34  ;;  %v243_v44 = vmax.f32 %v179_v35, 0.0  ;;  %304 = vst [vmem:[%s899_s3 + $0xa0] sm:$0xff] %v240_v39  ;;  %v180_v48 = vadd.f32 %v385_v2, %v109_v42  ;;  %v113_v49 = vmul.f32 %v380_v1, %v42_v36  ;;  %v114_v50 = vmul.f32 %v380_v1, %v43_v37  ;;  %v57_v33 = vld [vmem:[%s896_s0 + $0x158] sm:$0xff]  ;;  %v59_v39 = vld [vmem:[%s896_s0 + $0x168] sm:$0xff] }
  0x18   :  { %305 = vst [vmem:[%s899_s3 + $0xa8] sm:$0xff] %v241_v40  ;;  %306 = vst [vmem:[%s899_s3 + $0xb0] sm:$0xff] %v242_v41  ;;  %v115_v51 = vmul.f32 %v380_v1, %v44_v38  ;;  %v181_v52 = vadd.f32 %v385_v2, %v110_v45  ;;  %v182_v53 = vadd.f32 %v385_v2, %v111_v46  ;;  %v58_v38 = vld [vmem:[%s896_s0 + $0x160] sm:$0xff]  ;;  %v60_v40 = vld [vmem:[%s896_s0 + $0x170] sm:$0xff] }
  0x19   :  { %307 = vst [vmem:[%s899_s3 + $0xb8] sm:$0xff] %v243_v44  ;;  %v183_v54 = vadd.f32 %v385_v2, %v112_v47  ;;  %v116_v55 = vmul.f32 %v380_v1, %v45_v43  ;;  %v244_v57 = vmax.f32 %v180_v48, 0.0  ;;  %v184_v58 = vadd.f32 %v385_v2, %v113_v49  ;;  %v61_v45 = vld [vmem:[%s896_s0 + $0x178] sm:$0xff] }
  0x1a   :  { %v185_v59 = vadd.f32 %v385_v2, %v114_v50  ;;  %v186_v60 = vadd.f32 %v385_v2, %v115_v51  ;;  %v245_v0 = vmax.f32 %v181_v52, 0.0  ;;  %v246_v3 = vmax.f32 %v182_v53, 0.0 }
  0x1b   :  { %v247_v4 = vmax.f32 %v183_v54, 0.0  ;;  %v187_v5 = vadd.f32 %v385_v2, %v116_v55  ;;  %308 = vst [vmem:[%s899_s3 + $0xc0] sm:$0xff] %v244_v57  ;;  %v248_v9 = vmax.f32 %v184_v58, 0.0  ;;  %v117_v12 = vmul.f32 %v380_v1, %v46_v56  ;;  %v62_v58 = vld [vmem:[%s896_s0 + $0x180] sm:$0xff] }
  0x1c   :  { %v249_v10 = vmax.f32 %v185_v59, 0.0  ;;  %v250_v11 = vmax.f32 %v186_v60, 0.0  ;;  %309 = vst [vmem:[%s899_s3 + $0xc8] sm:$0xff] %v245_v0  ;;  %310 = vst [vmem:[%s899_s3 + $0xd0] sm:$0xff] %v246_v3  ;;  %v118_v15 = vmul.f32 %v380_v1, %v47_v61  ;;  %v119_v16 = vmul.f32 %v380_v1, %v48_v62  ;;  %v64_v0 = vld [vmem:[%s896_s0 + $0x190] sm:$0xff]  ;;  %v65_v3 = vld [vmem:[%s896_s0 + $0x198] sm:$0xff] }
  0x1d   :  { %311 = vst [vmem:[%s899_s3 + $0xd8] sm:$0xff] %v247_v4  ;;  %v251_v14 = vmax.f32 %v187_v5, 0.0  ;;  %v120_v17 = vmul.f32 %v380_v1, %v49_v63  ;;  %312 = vst [vmem:[%s899_s3 + $0xe0] sm:$0xff] %v248_v9  ;;  %v188_v18 = vadd.f32 %v385_v2, %v117_v12  ;;  %v121_v19 = vmul.f32 %v380_v1, %v50_v6  ;;  %v63_v63 = vld [vmem:[%s896_s0 + $0x188] sm:$0xff] }
  0x1e   :  { %313 = vst [vmem:[%s899_s3 + $0xe8] sm:$0xff] %v249_v10  ;;  %314 = vst [vmem:[%s899_s3 + $0xf0] sm:$0xff] %v250_v11  ;;  %v122_v20 = vmul.f32 %v380_v1, %v51_v7  ;;  %v123_v21 = vmul.f32 %v380_v1, %v52_v8  ;;  %v189_v22 = vadd.f32 %v385_v2, %v118_v15  ;;  %v66_v8 = vld [vmem:[%s896_s0 + $0x1a0] sm:$0xff]  ;;  %v67_v9 = vld [vmem:[%s896_s0 + $0x1a8] sm:$0xff] }
  0x1f   :  { %315 = vst [vmem:[%s899_s3 + $0xf8] sm:$0xff] %v251_v14  ;;  %v190_v23 = vadd.f32 %v385_v2, %v119_v16  ;;  %v191_v24 = vadd.f32 %v385_v2, %v120_v17  ;;  %v124_v25 = vmul.f32 %v380_v1, %v53_v13  ;;  %v252_v27 = vmax.f32 %v188_v18, 0.0  ;;  %v68_v10 = vld [vmem:[%s896_s0 + $0x1b0] sm:$0xff]  ;;  %v69_v15 = vld [vmem:[%s896_s0 + $0x1b8] sm:$0xff] }
  0x20   :  { %v192_v28 = vadd.f32 %v385_v2, %v121_v19  ;;  %v193_v29 = vadd.f32 %v385_v2, %v122_v20  ;;  %v194_v30 = vadd.f32 %v385_v2, %v123_v21  ;;  %v253_v34 = vmax.f32 %v189_v22, 0.0 }
  0x21   :  { %v254_v35 = vmax.f32 %v190_v23, 0.0  ;;  %v255_v36 = vmax.f32 %v191_v24, 0.0  ;;  %v195_v37 = vadd.f32 %v385_v2, %v124_v25  ;;  %316 = vst [vmem:[%s899_s3 + $0x100] sm:$0xff] %v252_v27  ;;  %v125_v44 = vmul.f32 %v380_v1, %v54_v26 }
  0x22   :  { %v256_v41 = vmax.f32 %v192_v28, 0.0  ;;  %v257_v42 = vmax.f32 %v193_v29, 0.0  ;;  %v258_v43 = vmax.f32 %v194_v30, 0.0  ;;  %317 = vst [vmem:[%s899_s3 + $0x108] sm:$0xff] %v253_v34  ;;  %v126_v47 = vmul.f32 %v380_v1, %v55_v31  ;;  %v70_v28 = vld [vmem:[%s896_s0 + $0x1c0] sm:$0xff]  ;;  %v72_v34 = vld [vmem:[%s896_s0 + $0x1d0] sm:$0xff] }
  0x23   :  { %318 = vst [vmem:[%s899_s3 + $0x110] sm:$0xff] %v254_v35  ;;  %319 = vst [vmem:[%s899_s3 + $0x118] sm:$0xff] %v255_v36  ;;  %v259_v46 = vmax.f32 %v195_v37, 0.0  ;;  %v127_v48 = vmul.f32 %v380_v1, %v56_v32  ;;  %v128_v49 = vmul.f32 %v380_v1, %v57_v33  ;;  %v196_v50 = vadd.f32 %v385_v2, %v125_v44  ;;  %v71_v33 = vld [vmem:[%s896_s0 + $0x1c8] sm:$0xff]  ;;  %v73_v35 = vld [vmem:[%s896_s0 + $0x1d8] sm:$0xff] }
  0x24   :  { %320 = vst [vmem:[%s899_s3 + $0x120] sm:$0xff] %v256_v41  ;;  %321 = vst [vmem:[%s899_s3 + $0x128] sm:$0xff] %v257_v42  ;;  %v129_v51 = vmul.f32 %v380_v1, %v58_v38  ;;  %v130_v52 = vmul.f32 %v380_v1, %v59_v39  ;;  %v131_v53 = vmul.f32 %v380_v1, %v60_v40  ;;  %v74_v40 = vld [vmem:[%s896_s0 + $0x1e0] sm:$0xff]  ;;  %v75_v41 = vld [vmem:[%s896_s0 + $0x1e8] sm:$0xff] }
  0x25   :  { %322 = vst [vmem:[%s899_s3 + $0x130] sm:$0xff] %v258_v43  ;;  %323 = vst [vmem:[%s899_s3 + $0x138] sm:$0xff] %v259_v46  ;;  %v197_v54 = vadd.f32 %v385_v2, %v126_v47  ;;  %v198_v55 = vadd.f32 %v385_v2, %v127_v48  ;;  %v199_v56 = vadd.f32 %v385_v2, %v128_v49  ;;  %v260_v59 = vmax.f32 %v196_v50, 0.0  ;;  %v76_v42 = vld [vmem:[%s896_s0 + $0x1f0] sm:$0xff]  ;;  %v77_v47 = vld [vmem:[%s896_s0 + $0x1f8] sm:$0xff] }
  0x26   :  { %v132_v57 = vmul.f32 %v380_v1, %v61_v45  ;;  %v200_v60 = vadd.f32 %v385_v2, %v129_v51  ;;  %v201_v61 = vadd.f32 %v385_v2, %v130_v52  ;;  %v202_v62 = vadd.f32 %v385_v2, %v131_v53 }
  0x27   :  { %v261_v4 = vmax.f32 %v197_v54, 0.0  ;;  %v262_v5 = vmax.f32 %v198_v55, 0.0  ;;  %v263_v6 = vmax.f32 %v199_v56, 0.0  ;;  %324 = vst [vmem:[%s899_s3 + $0x140] sm:$0xff] %v260_v59  ;;  %v133_v14 = vmul.f32 %v380_v1, %v62_v58 }
  0x28   :  { %v203_v7 = vadd.f32 %v385_v2, %v132_v57  ;;  %v264_v11 = vmax.f32 %v200_v60, 0.0  ;;  %v265_v12 = vmax.f32 %v201_v61, 0.0  ;;  %v266_v13 = vmax.f32 %v202_v62, 0.0 }
  0x29   :  { %325 = vst [vmem:[%s899_s3 + $0x148] sm:$0xff] %v261_v4  ;;  %326 = vst [vmem:[%s899_s3 + $0x150] sm:$0xff] %v262_v5  ;;  %v134_v17 = vmul.f32 %v380_v1, %v63_v63  ;;  %v135_v18 = vmul.f32 %v380_v1, %v64_v0  ;;  %v136_v19 = vmul.f32 %v380_v1, %v65_v3 }
  0x2a   :  { %327 = vst [vmem:[%s899_s3 + $0x158] sm:$0xff] %v263_v6  ;;  %v267_v16 = vmax.f32 %v203_v7, 0.0  ;;  %328 = vst [vmem:[%s899_s3 + $0x160] sm:$0xff] %v264_v11  ;;  %v204_v20 = vadd.f32 %v385_v2, %v133_v14  ;;  %v137_v21 = vmul.f32 %v380_v1, %v66_v8  ;;  %v138_v22 = vmul.f32 %v380_v1, %v67_v9 }
  0x2b   :  { %329 = vst [vmem:[%s899_s3 + $0x168] sm:$0xff] %v265_v12  ;;  %330 = vst [vmem:[%s899_s3 + $0x170] sm:$0xff] %v266_v13  ;;  %v139_v23 = vmul.f32 %v380_v1, %v68_v10  ;;  %v205_v24 = vadd.f32 %v385_v2, %v134_v17  ;;  %v206_v25 = vadd.f32 %v385_v2, %v135_v18 }
  0x2c   :  { %331 = vst [vmem:[%s899_s3 + $0x178] sm:$0xff] %v267_v16  ;;  %v207_v26 = vadd.f32 %v385_v2, %v136_v19  ;;  %v140_v27 = vmul.f32 %v380_v1, %v69_v15  ;;  %v268_v29 = vmax.f32 %v204_v20, 0.0  ;;  %v208_v30 = vadd.f32 %v385_v2, %v137_v21 }
  0x2d   :  { %v209_v31 = vadd.f32 %v385_v2, %v138_v22  ;;  %v210_v32 = vadd.f32 %v385_v2, %v139_v23  ;;  %v269_v36 = vmax.f32 %v205_v24, 0.0  ;;  %v270_v37 = vmax.f32 %v206_v25, 0.0 }
  0x2e   :  { %v271_v38 = vmax.f32 %v207_v26, 0.0  ;;  %v211_v39 = vadd.f32 %v385_v2, %v140_v27  ;;  %332 = vst [vmem:[%s899_s3 + $0x180] sm:$0xff] %v268_v29  ;;  %v272_v43 = vmax.f32 %v208_v30, 0.0  ;;  %v141_v46 = vmul.f32 %v380_v1, %v70_v28 }
  0x2f   :  { %v273_v44 = vmax.f32 %v209_v31, 0.0  ;;  %v274_v45 = vmax.f32 %v210_v32, 0.0  ;;  %333 = vst [vmem:[%s899_s3 + $0x188] sm:$0xff] %v269_v36  ;;  %334 = vst [vmem:[%s899_s3 + $0x190] sm:$0xff] %v270_v37  ;;  %v142_v49 = vmul.f32 %v380_v1, %v71_v33  ;;  %v143_v50 = vmul.f32 %v380_v1, %v72_v34 }
  0x30   :  { %335 = vst [vmem:[%s899_s3 + $0x198] sm:$0xff] %v271_v38  ;;  %v275_v48 = vmax.f32 %v211_v39, 0.0  ;;  %v144_v51 = vmul.f32 %v380_v1, %v73_v35  ;;  %336 = vst [vmem:[%s899_s3 + $0x1a0] sm:$0xff] %v272_v43  ;;  %v212_v52 = vadd.f32 %v385_v2, %v141_v46  ;;  %v145_v53 = vmul.f32 %v380_v1, %v74_v40 }
  0x31   :  { %337 = vst [vmem:[%s899_s3 + $0x1a8] sm:$0xff] %v273_v44  ;;  %338 = vst [vmem:[%s899_s3 + $0x1b0] sm:$0xff] %v274_v45  ;;  %v146_v54 = vmul.f32 %v380_v1, %v75_v41  ;;  %v147_v55 = vmul.f32 %v380_v1, %v76_v42  ;;  %v213_v56 = vadd.f32 %v385_v2, %v142_v49 }
  0x32   :  { %339 = vst [vmem:[%s899_s3 + $0x1b8] sm:$0xff] %v275_v48  ;;  %v214_v57 = vadd.f32 %v385_v2, %v143_v50  ;;  %v215_v58 = vadd.f32 %v385_v2, %v144_v51  ;;  %v148_v59 = vmul.f32 %v380_v1, %v77_v47  ;;  %v276_v60 = vmax.f32 %v212_v52, 0.0 }
  0x33   :  { %v216_v61 = vadd.f32 %v385_v2, %v145_v53  ;;  %v217_v62 = vadd.f32 %v385_v2, %v146_v54  ;;  %v218_v63 = vadd.f32 %v385_v2, %v147_v55  ;;  %v277_v0 = vmax.f32 %v213_v56, 0.0 }
  0x34   :  { %v278_v3 = vmax.f32 %v214_v57, 0.0  ;;  %v279_v4 = vmax.f32 %v215_v58, 0.0  ;;  %v219_v5 = vadd.f32 %v385_v2, %v148_v59  ;;  %340 = vst [vmem:[%s899_s3 + $0x1c0] sm:$0xff] %v276_v60 }
  0x35   :  { %v280_v6 = vmax.f32 %v216_v61, 0.0  ;;  %v281_v7 = vmax.f32 %v217_v62, 0.0  ;;  %v282_v8 = vmax.f32 %v218_v63, 0.0  ;;  %341 = vst [vmem:[%s899_s3 + $0x1c8] sm:$0xff] %v277_v0 }
  0x36   :  { %342 = vst [vmem:[%s899_s3 + $0x1d0] sm:$0xff] %v278_v3  ;;  %343 = vst [vmem:[%s899_s3 + $0x1d8] sm:$0xff] %v279_v4  ;;  %v283_v1 = vmax.f32 %v219_v5, 0.0 }
  0x37   :  { %344 = vst [vmem:[%s899_s3 + $0x1e0] sm:$0xff] %v280_v6  ;;  %345 = vst [vmem:[%s899_s3 + $0x1e8] sm:$0xff] %v281_v7 }
  0x38   :  { %346 = vst [vmem:[%s899_s3 + $0x1f0] sm:$0xff] %v282_v8  ;;  %347 = vst [vmem:[%s899_s3 + $0x1f8] sm:$0xff] %v283_v1 }

// kernel: irblock_forward.2
= control target key start
LH: loop header
LB: loop body
LE: loop exit
PB: predicated region body
PF: predicated region fallthrough
CT: control target
= control target key end

     0   :  { %s2305_s12 = smov 0   ;;  %s2307_s13 = smov 0   ;;  %s3094_s0 = inlined_call_operand.vmem [shape: f32[2,18,18,128], index: 0, kind: input, shape index: {}]   ;;  %s3095_s1 = inlined_call_operand.vmem [shape: f32[3,384,128], index: 1, kind: input, shape index: {}]   ;;  %s3096_s2 = inlined_call_operand.vmem [shape: f32[2,16,16,128], index: 2, kind: output, shape index: {0}]   ;;  %s3097_s3 = inlined_call_operand.vmem [shape: f32[8,1,256], index: 3, kind: output, shape index: {1}]  }
   0x1   :  { %s2309_s14 = smov 0   ;;  %s2311_s15 = smov 0  }
   0x2   :  { %s2313_s16 = smov 0  }
   0x3 LB: > { %s23_s17 = sadd.s32 1, %s2274_s14  ;;  %s26_s18 = sadd.s32 1, %s2278_s15  ;;  %s2282_s16 = sphi %s2313_s16, %s14_s16   ;;  %s2278_s15 = sphi %s2311_s15, %s3101_s15   ;;  %s2274_s14 = sphi %s2309_s14, %s3100_s14   ;;  %s2270_s13 = sphi %s2307_s13, %s3099_s13   ;;  %s2266_s12 = sphi %s2305_s12, %s3098_s12  }
   0x4   : > { %p24_p0 = scmp.ge.s32.totalorder %s23_s17, 4  ;;  %p1462_p1 = scmp.ge.s32.totalorder %s2282_s16, 1 }
   0x5   : > { %p158_p2 = scmp.lt.s32.totalorder %s2282_s16, 9 }
   0x6   : > { %s3103_s17 = smov (%p24_p0, %s23_s17), 0  ;;  %s3105_s18 = smov (!%p24_p0, %s26_s18), %s2278_s15 }
   0x7   : > { %p159_p3 = pnand %p1462_p1, %p158_p2  ;;  %p28_p4 = scmp.ge.s32.totalorder %s3105_s18, 2 }
   0x8   : > { %v1502_v0 = vld [vmem:[%s3095_s1 + $0x200] sm:$0xff] (!%p159_p3)  ;;  %v1503_v1 = vld [vmem:[%s3095_s1 + $0x208] sm:$0xff] (!%p159_p3)  ;;  %p193_p5 = scmp.lt.s32.totalorder (!%p159_p3), %s2270_s13, 1  ;;  %v1504_v9 = vld [vmem:[%s3095_s1 + $0x210] sm:$0xff] (!%p159_p3)  ;;  %s1471_s30 = smul.u32 (!%p159_p3), 96, %s2266_s12  ;;  %vm244_vm0 = vcmask (!%p159_p3), 1046528  }
   0x9   : > { %s3107_s18 = smov (%p28_p4, %s3105_s18), 0  ;;  %162 = sbr.rel (%p159_p3) target bundleno = 379 (0x17b), region = 28 }
   0xa   : > { %v1518_v2 = vld [vmem:[%s3095_s1 + $0x280] sm:$0xff] (!%p159_p3)  ;;  %v1970_v3 = vpack.c.bf16 (!%p159_p3), %v1503_v1, %v1502_v0  ;;  %v1519_v4 = vld [vmem:[%s3095_s1 + $0x288] sm:$0xff] (!%p159_p3)  ;;  %v1505_v10 = vld [vmem:[%s3095_s1 + $0x218] sm:$0xff] (!%p159_p3)  ;;  %vm273_vm1 = vcmask (!%p159_p3), 1045504  }
   0xb   : > { %v1486_v5 = vld [vmem:[%s3095_s1 + $0x180] sm:$0xff] (!%p159_p3)  ;;  %v1487_v6 = vld [vmem:[%s3095_s1 + $0x188] sm:$0xff] (!%p159_p3)  ;;  %v2002_v7 = vpack.c.bf16 (!%p159_p3), %v1519_v4, %v1518_v2  ;;  %v1520_v11 = vld [vmem:[%s3095_s1 + $0x290] sm:$0xff] (!%p159_p3)  ;;  %v1974_v12 = vpack.c.bf16 (!%p159_p3), %v1505_v10, %v1504_v9 }
   0xc   : > { %v1972_v8 = vpack.c.bf16 (!%p159_p3), %v1487_v6, %v1486_v5  ;;  %1971 = vmatprep.subr.bf16.mxu0 (!%p159_p3), %v1970_v3  ;;  %v1521_v13 = vld [vmem:[%s3095_s1 + $0x298] sm:$0xff] (!%p159_p3)  ;;  %v1488_v14 = vld [vmem:[%s3095_s1 + $0x190] sm:$0xff] (!%p159_p3)  ;;  %v1506_v18 = vld [vmem:[%s3095_s1 + $0x220] sm:$0xff] (!%p159_p3) }
   0xd   : > { %v1489_v15 = vld [vmem:[%s3095_s1 + $0x198] sm:$0xff] (!%p159_p3)  ;;  %2003 = vmatprep.subr.bf16.mxu1 (!%p159_p3), %v2002_v7  ;;  %v2006_v16 = vpack.c.bf16 (!%p159_p3), %v1521_v13, %v1520_v11  ;;  %v1507_v19 = vld [vmem:[%s3095_s1 + $0x228] sm:$0xff] (!%p159_p3)  ;;  %v1522_v20 = vld [vmem:[%s3095_s1 + $0x2a0] sm:$0xff] (!%p159_p3) }
   0xe   : > { %1973 = vmatpush3.bf16.msra.mxu0 (!%p159_p3), %v1972_v8  ;;  %v1976_v17 = vpack.c.bf16 (!%p159_p3), %v1489_v15, %v1488_v14  ;;  %2005 = vmatpush3.bf16.msra.mxu1 (!%p159_p3), %v2002_v7  ;;  %v1978_v21 = vpack.c.bf16 (!%p159_p3), %v1507_v19, %v1506_v18  ;;  %v1523_v22 = vld [vmem:[%s3095_s1 + $0x2a8] sm:$0xff] (!%p159_p3)  ;;  %v1490_v23 = vld [vmem:[%s3095_s1 + $0x1a0] sm:$0xff] (!%p159_p3)  ;;  %v1508_v26 = vld [vmem:[%s3095_s1 + $0x230] sm:$0xff] (!%p159_p3) }
   0xf   : > { %1975 = vmatprep.subr.bf16.mxu0 (!%p159_p3), %v1974_v12  ;;  %v1491_v24 = vld [vmem:[%s3095_s1 + $0x1a8] sm:$0xff] (!%p159_p3)  ;;  %2007 = vmatprep.subr.bf16.mxu1 (!%p159_p3), %v2006_v16  ;;  %v2010_v25 = vpack.c.bf16 (!%p159_p3), %v1523_v22, %v1522_v20  ;;  %v1509_v27 = vld [vmem:[%s3095_s1 + $0x238] sm:$0xff] (!%p159_p3)  ;;  %v1524_v28 = vld [vmem:[%s3095_s1 + $0x2b0] sm:$0xff] (!%p159_p3) }
  0x10   : > { %s2368_s10 = scalar_select %p193_p5, %s2270_s13, 1  ;;  %v1525_v29 = vld [vmem:[%s3095_s1 + $0x2b8] sm:$0xff]  ;;  %v1980_v30 = vpack.c.bf16 %v1491_v24, %v1490_v23  ;;  %v1982_v31 = vpack.c.bf16 %v1509_v27, %v1508_v26  ;;  %v1492_v32 = vld [vmem:[%s3095_s1 + $0x1b0] sm:$0xff]  ;;  %v1510_v35 = vld [vmem:[%s3095_s1 + $0x240] sm:$0xff] }
  0x11   : > { %v1493_v33 = vld [vmem:[%s3095_s1 + $0x1b8] sm:$0xff]  ;;  %v2014_v34 = vpack.c.bf16 %v1525_v29, %v1524_v28  ;;  %v1511_v36 = vld [vmem:[%s3095_s1 + $0x248] sm:$0xff]  ;;  %v1526_v37 = vld [vmem:[%s3095_s1 + $0x2c0] sm:$0xff] }
  0x12   : > { %s2202_s21 = smul.u32 432, %s2368_s10  ;;  %1977 = vmatpush3.bf16.msra.mxu0 %v1976_v17  ;;  %2009 = vmatpush3.bf16.msra.mxu1 %v2006_v16  ;;  %v1527_v38 = vld [vmem:[%s3095_s1 + $0x2c8] sm:$0xff]  ;;  %v1984_v39 = vpack.c.bf16 %v1493_v33, %v1492_v32  ;;  %v1494_v40 = vld [vmem:[%s3095_s1 + $0x1c0] sm:$0xff]  ;;  %v1986_v41 = vpack.c.bf16 %v1511_v36, %v1510_v35  ;;  %v1512_v43 = vld [vmem:[%s3095_s1 + $0x250] sm:$0xff]  ;;  %s1466_s20 = sshll.u32 %s2368_s10, 5 }
  0x13   : > { %1979 = vmatprep.subr.bf16.mxu0 %v1978_v21  ;;  %2011 = vmatprep.subr.bf16.mxu1 %v2010_v25  ;;  %v1495_v42 = vld [vmem:[%s3095_s1 + $0x1c8] sm:$0xff]  ;;  %v1513_v44 = vld [vmem:[%s3095_s1 + $0x258] sm:$0xff]  ;;  %v2018_v45 = vpack.c.bf16 %v1527_v38, %v1526_v37  ;;  %v1528_v46 = vld [vmem:[%s3095_s1 + $0x2d0] sm:$0xff]  ;;  %s1468_s10 = sshll.u32 %s2270_s13, 2 }
  0x14   : > { %s197_s11 = scalar_lea.vmem %s3094_s0, %s2202_s21  ;;  %v1529_v47 = vld [vmem:[%s3095_s1 + $0x2d8] sm:$0xff]  ;;  %v1988_v48 = vpack.c.bf16 %v1495_v42, %v1494_v40  ;;  %v1990_v49 = vpack.c.bf16 %v1513_v44, %v1512_v43  ;;  %v1496_v52 = vld [vmem:[%s3095_s1 + $0x1d0] sm:$0xff]  ;;  %v1514_v59 = vld [vmem:[%s3095_s1 + $0x260] sm:$0xff]  ;;  %s210_s27 = sadd.s32 %s2266_s12, %s1468_s10 }
  0x15   : > { %s2444_s5 = scalar_lea.vmem %s197_s11, %s1471_s30  ;;  %v1497_v53 = vld [vmem:[%s3095_s1 + $0x1d8] sm:$0xff]  ;;  %v2022_v58 = vpack.c.bf16 %v1529_v47, %v1528_v46  ;;  %v1515_v60 = vld [vmem:[%s3095_s1 + $0x268] sm:$0xff]  ;;  %v1530_v61 = vld [vmem:[%s3095_s1 + $0x2e0] sm:$0xff]  ;;  %s1464_s11 = sshll.u32 %s2266_s12, 2 }
  0x16   : > { %1981 = vmatpush3.bf16.msra.mxu0 %v1980_v30  ;;  %2013 = vmatpush3.bf16.msra.mxu1 %v2010_v25  ;;  %v2453_v50 = vld [vmem:[%s2444_s5 + $0x18] sm:$0xff]  ;;  %v2456_v51 = vld [vmem:[%s2444_s5 + $0x20] sm:$0xff]  ;;  %v1531_v62 = vld [vmem:[%s3095_s1 + $0x2e8] sm:$0xff]  ;;  %v1992_v1 = vpack.c.bf16 %v1497_v53, %v1496_v52  ;;  %v1994_v2 = vpack.c.bf16 %v1515_v60, %v1514_v59  ;;  %p201_p6 = scmp.lt.s32.totalorder %s1464_s11, 15  ;;  %p211_p7 = scmp.lt.s32.totalorder %s210_s27, 7 }
  0x17   : > { %1983 = vmatprep.subr.bf16.mxu0 %v1982_v31  ;;  %2015 = vmatprep.subr.bf16.mxu1 %v2014_v34  ;;  %v377_v54 = vrot.slane %v2453_v50, 1  ;;  %v2466_v55 = vrot.slane %v2456_v51, 1  ;;  %v405_v56 = vrot.slane %v2453_v50, 2  ;;  %v2470_v57 = vrot.slane %v2456_v51, 2  ;;  %v1498_v3 = vld [vmem:[%s3095_s1 + $0x1e0] sm:$0xff]  ;;  %v1499_v4 = vld [vmem:[%s3095_s1 + $0x1e8] sm:$0xff] }
  0x18   : > { %v2026_v5 = vpack.c.bf16 %v1531_v62, %v1530_v61  ;;  %v1516_v6 = vld [vmem:[%s3095_s1 + $0x270] sm:$0xff]  ;;  %v1517_v7 = vld [vmem:[%s3095_s1 + $0x278] sm:$0xff]  ;;  %v1996_v10 = vpack.c.bf16 %v1499_v4, %v1498_v3  ;;  %v318_v15 = vld [vmem:[%s3095_s1 + $0x80] sm:$0xff]  ;;  %s3109_s11 = smov (!%p201_p6, %s1464_s11), 15  ;;  %s3111_s27 = smov (!%p211_p7, %s210_s27), 7 }
  0x19   : > { %v2486_v63 = vsel %vm244_vm0, %v377_v54, %v2466_v55  ;;  %v2490_v0 = vsel %vm273_vm1, %v405_v56, %v2470_v57  ;;  %v1532_v8 = vld [vmem:[%s3095_s1 + $0x2f0] sm:$0xff]  ;;  %v1533_v9 = vld [vmem:[%s3095_s1 + $0x2f8] sm:$0xff]  ;;  %v1998_v11 = vpack.c.bf16 %v1517_v7, %v1516_v6  ;;  %v319_v16 = vld [vmem:[%s3095_s1 + $0x88] sm:$0xff]  ;;  %s1465_s19 = sshll.u32 %s3109_s11, 1  ;;  %s1469_s13 = sshll.u32 %s3111_s27, 1 }
  0x1a   : > { %1985 = vmatpush3.bf16.msra.mxu0 %v1984_v39  ;;  %2017 = vmatpush3.bf16.msra.mxu1 %v2014_v34  ;;  %v1500_v12 = vld [vmem:[%s3095_s1 + $0x1f0] sm:$0xff]  ;;  %v1501_v13 = vld [vmem:[%s3095_s1 + $0x1f8] sm:$0xff]  ;;  %v2030_v14 = vpack.c.bf16 %v1533_v9, %v1532_v8  ;;  %v1476_v17 = vld [vmem:[%s2444_s5 + $0x28] sm:$0x3]  ;;  %v2034_v21 = vpack.c.bf16 %v319_v16, %v318_v15  ;;  %s205_s22 = sadd.s32 %s1466_s20, %s1465_s19  ;;  %s214_s28 = scalar_lea.vmem %s3097_s3, %s1469_s13 }
  0x1b   : > { %1987 = vmatprep.subr.bf16.mxu0 %v1986_v41  ;;  %2019 = vmatprep.subr.bf16.mxu1 %v2018_v45  ;;  %v334_v18 = vld [vmem:[%s3095_s1 + $0x100] sm:$0xff]  ;;  %v335_v19 = vld [vmem:[%s3095_s1 + $0x108] sm:$0xff]  ;;  %v2000_v20 = vpack.c.bf16 %v1501_v13, %v1500_v12  ;;  %v408_v22 = vrot.slane %v1476_v17, 2  ;;  %v380_v26 = vrot.slane %v1476_v17, 1  ;;  %v320_v27 = vld [vmem:[%s3095_s1 + $0x90] sm:$0xff]  ;;  %s1467_s23 = sshll.u32 %s205_s22, 3 }
  0x1c   : > { %546 = vmatprep.mubr.f32.mxu0 %v2486_v63  ;;  %1870 = vmatprep.mubr.f32.mxu1 %v2490_v0  ;;  %v302_v23 = vld [vmem:[%s3095_s1] sm:$0xff]  ;;  %v303_v24 = vld [vmem:[%s3095_s1 + $0x8] sm:$0xff]  ;;  %v2066_v25 = vpack.c.bf16 %v335_v19, %v334_v18  ;;  %v2541_v28 = vld [vmem:[%s2444_s5 + $0x30] sm:$0xff]  ;;  %s3060_s26 = scalar_lea.vmem %s3096_s2, %s1467_s23 }
  0x1d   : > { %v2544_v29 = vld [vmem:[%s2444_s5 + $0x38] sm:$0xff]  ;;  %v336_v31 = vld [vmem:[%s3095_s1 + $0x110] sm:$0xff]  ;;  %v2036_v33 = vpack.c.bf16 %v303_v24, %v302_v23  ;;  %v410_v34 = vrot.slane %v2541_v28, 2  ;;  %v409_v36 = vsel %vm273_vm1, %v2470_v57, %v408_v22  ;;  %v382_v39 = vrot.slane %v2541_v28, 1  ;;  %v322_v41 = vld [vmem:[%s3095_s1 + $0xa0] sm:$0xff] }
  0x1e   : > { %1989 = vmatpush3.bf16.msra.mxu0 %v1988_v48  ;;  %2021 = vmatpush3.bf16.msra.mxu1 %v2018_v45  ;;  %v321_v30 = vld [vmem:[%s3095_s1 + $0x98] sm:$0xff]  ;;  %v2557_v35 = vrot.slane %v2544_v29, 2  ;;  %v304_v37 = vld [vmem:[%s3095_s1 + $0x10] sm:$0xff]  ;;  %v2569_v40 = vrot.slane %v2544_v29, 1  ;;  %v381_v42 = vsel %vm244_vm0, %v2466_v55, %v380_v26  ;;  %v323_v45 = vld [vmem:[%s3095_s1 + $0xa8] sm:$0xff] }
  0x1f   : > { %1991 = vmatprep.subr.bf16.mxu0 %v1990_v49  ;;  %2023 = vmatprep.subr.bf16.mxu1 %v2022_v58  ;;  %v337_v32 = vld [vmem:[%s3095_s1 + $0x118] sm:$0xff]  ;;  %v2038_v43 = vpack.c.bf16 %v321_v30, %v320_v27  ;;  %v338_v46 = vld [vmem:[%s3095_s1 + $0x120] sm:$0xff]  ;;  %v339_v48 = vld [vmem:[%s3095_s1 + $0x128] sm:$0xff]  ;;  %v2042_v61 = vpack.c.bf16 %v323_v45, %v322_v41 }
  0x20   : > { %v305_v38 = vld [vmem:[%s3095_s1 + $0x18] sm:$0xff]  ;;  %v2070_v44 = vpack.c.bf16 %v337_v32, %v336_v31  ;;  %v1479_v47 = vld [vmem:[%s2444_s5 + $0x40] sm:$0x3]  ;;  %v2588_v49 = vld [vmem:[%s2444_s5 + $0x48] sm:$0xff]  ;;  %v2595_v56 = vsel %vm273_vm1, %v410_v34, %v2557_v35  ;;  %v2603_v60 = vsel %vm244_vm0, %v382_v39, %v2569_v40  ;;  %v2074_v4 = vpack.c.bf16 %v339_v48, %v338_v46 }
  0x21   : > { %v2591_v52 = vld [vmem:[%s2444_s5 + $0x50] sm:$0xff]  ;;  %v413_v53 = vrot.slane %v1479_v47, 2  ;;  %v2040_v54 = vpack.c.bf16 %v305_v38, %v304_v37  ;;  %v306_v62 = vld [vmem:[%s3095_s1 + $0x20] sm:$0xff]  ;;  %v2621_v7 = vld [vmem:[%s2444_s5 + $0x58] sm:$0x3] }
  0x22   : > { %1993 = vmatpush3.bf16.msra.mxu0 %v1992_v1  ;;  %2025 = vmatpush3.bf16.msra.mxu1 %v2022_v58  ;;  %v415_v58 = vrot.slane %v2588_v49, 2  ;;  %v2599_v59 = vrot.slane %v2591_v52, 2  ;;  %v307_v1 = vld [vmem:[%s3095_s1 + $0x28] sm:$0xff]  ;;  %v324_v3 = vld [vmem:[%s3095_s1 + $0xb0] sm:$0xff]  ;;  %v341_v8 = vld [vmem:[%s3095_s1 + $0x138] sm:$0xff]  ;;  %v418_v12 = vrot.slane %v2621_v7, 2 }
  0x23   : > { %1995 = vmatprep.subr.bf16.mxu0 %v1994_v2  ;;  %2027 = vmatprep.subr.bf16.mxu1 %v2026_v5  ;;  %v385_v2 = vrot.slane %v1479_v47, 1  ;;  %v340_v6 = vld [vmem:[%s3095_s1 + $0x130] sm:$0xff]  ;;  %v414_v9 = vsel %vm273_vm1, %v2557_v35, %v413_v53  ;;  %v2044_v13 = vpack.c.bf16 %v307_v1, %v306_v62  ;;  %v2656_v22 = vrot.slane %v2591_v52, 1  ;;  %v2659_v23 = vld [vmem:[%s2444_s5] sm:$0xff]  ;;  %v2662_v24 = vld [vmem:[%s2444_s5 + $0x8] sm:$0xff] }
  0x24   : > { %v2643_v15 = vsel %vm273_vm1, %v415_v58, %v2599_v59  ;;  %v326_v26 = vld [vmem:[%s3095_s1 + $0xc0] sm:$0xff]  ;;  %v327_v27 = vld [vmem:[%s3095_s1 + $0xc8] sm:$0xff]  ;;  %v2671_v30 = vld [vmem:[%s2444_s5 + $0x70] sm:$0x3]  ;;  %v274_v38 = vrot.slane %v2659_v23, 2  ;;  %v275_v39 = vrot.slane %v2662_v24, 2 }
  0x25   : > { %v386_v18 = vsel %vm244_vm0, %v2569_v40, %v385_v2  ;;  %v342_v31 = vld [vmem:[%s3095_s1 + $0x140] sm:$0xff]  ;;  %v343_v32 = vld [vmem:[%s3095_s1 + $0x148] sm:$0xff]  ;;  %v423_v34 = vrot.slane %v2671_v30, 2  ;;  %v390_v45 = vrot.slane %v2621_v7, 1  ;;  %v328_v47 = vld [vmem:[%s3095_s1 + $0xd0] sm:$0xff] }
  0x26   : > { %1997 = vmatpush3.bf16.msra.mxu0 %v1996_v10  ;;  %2029 = vmatpush3.bf16.msra.mxu1 %v2026_v5  ;;  %v325_v5 = vld [vmem:[%s3095_s1 + $0xb8] sm:$0xff]  ;;  %v2631_v10 = vld [vmem:[%s2444_s5 + $0x60] sm:$0xff]  ;;  %v2082_v46 = vpack.c.bf16 %v343_v32, %v342_v31  ;;  %v344_v53 = vld [vmem:[%s3095_s1 + $0x150] sm:$0xff]  ;;  %v276_v62 = vsel %vm273_vm1, %v274_v38, %v275_v39 }
  0x27   : > { %1999 = vmatprep.subr.bf16.mxu0 %v1998_v11  ;;  %2031 = vmatprep.subr.bf16.mxu1 %v2030_v14  ;;  %v2634_v11 = vld [vmem:[%s2444_s5 + $0x68] sm:$0xff]  ;;  %v420_v16 = vrot.slane %v2631_v10, 2  ;;  %v2046_v19 = vpack.c.bf16 %v325_v5, %v324_v3  ;;  %v329_v48 = vld [vmem:[%s3095_s1 + $0xd8] sm:$0xff]  ;;  %v391_v1 = vsel %vm244_vm0, %v2656_v22, %v390_v45  ;;  %v312_v3 = vld [vmem:[%s3095_s1 + $0x50] sm:$0xff]  ;;  %v392_v5 = vrot.slane %v2631_v10, 1 }
  0x28   : > { %v2647_v17 = vrot.slane %v2634_v11, 2  ;;  %v2054_v2 = vpack.c.bf16 %v329_v48, %v328_v47  ;;  %v330_v7 = vld [vmem:[%s3095_s1 + $0xe0] sm:$0xff]  ;;  %v1541_v45 = vld [vmem:[%s2444_s5 + $0x58] sm:$0x3]  ;;  %v316_v48 = vld [vmem:[%s3095_s1 + $0x70] sm:$0xff] }
  0x29   : > { %v2781_v47 = vld [vmem:[%s2444_s5 + $0x78] sm:$0xff] }
  0x2a   : > { %2001 = vmatpush3.bf16.msra.mxu0 %v2000_v20  ;;  %2033 = vmatpush3.bf16.msra.mxu1 %v2030_v14  ;;  %v308_v14 = vld [vmem:[%s3095_s1 + $0x30] sm:$0xff]  ;;  %v309_v20 = vld [vmem:[%s3095_s1 + $0x38] sm:$0xff]  ;;  %v2686_v37 = vsel %vm273_vm1, %v420_v16, %v2647_v17  ;;  %v424_v58 = vsel %vm273_vm1, %v2647_v17, %v423_v34  ;;  %v315_v16 = vld [vmem:[%s3095_s1 + $0x68] sm:$0xff]  ;;  %v246_v34 = vrot.slane %v2662_v24, 1 }
  0x2b   : > { %2035 = vmatprep.subr.bf16.mxu0 %v2034_v21  ;;  %2067 = vmatprep.subr.bf16.mxu1 %v2066_v25  ;;  %v387_v21 = vrot.slane %v2588_v49, 1 }
  0x2d   : > { %547 = vmatmul.mubr.f32.vlgmr.msra.gmra.mrb[0].mxu0 %v2453_v50  ;;  %1871 = vmatmul.mubr.f32.vlgmr.msra.gmra.mrb[0].mxu1 %v409_v36  ;;  %v2048_v36 = vpack.c.bf16 %v309_v20, %v308_v14  ;;  %v2692_v41 = vsel %vm244_vm0, %v387_v21, %v2656_v22  ;;  %v314_v14 = vld [vmem:[%s3095_s1 + $0x60] sm:$0xff]  ;;  %v333_v21 = vld [vmem:[%s3095_s1 + $0xf8] sm:$0xff] }
  0x2e   : > { %2037 = vmatpush3.bf16.msra.mxu0 %v2036_v33  ;;  %2069 = vmatpush3.bf16.msra.mxu1 %v2066_v25  ;;  %v2078_v25 = vpack.c.bf16 %v341_v8, %v340_v6  ;;  %v419_v33 = vsel %vm273_vm1, %v2599_v59, %v418_v12  ;;  %v2731_v6 = vrot.slane %v2634_v11, 1  ;;  %v346_v12 = vld [vmem:[%s3095_s1 + $0x160] sm:$0xff]  ;;  %v2060_v32 = vpack.c.bf16 %v315_v16, %v314_v14 }
  0x2f   : > { %551 = vmatprep.mubr.f32.mxu0 %v381_v42  ;;  %2039 = vmatprep.subr.bf16.mxu0 %v2038_v43  ;;  %v2050_v42 = vpack.c.bf16 %v327_v27, %v326_v26  ;;  %v310_v43 = vld [vmem:[%s3095_s1 + $0x40] sm:$0xff]  ;;  %v349_v26 = vld [vmem:[%s3095_s1 + $0x178] sm:$0xff] }
  0x30   : > { %2071 = vmatprep.subr.bf16.mxu1 %v2070_v44  ;;  %1873 = vmatprep.mubr.f32.mxu1 %v2595_v56  ;;  %v2769_v27 = vsel %vm244_vm0, %v392_v5, %v2731_v6  ;;  %v1547_v5 = vld [vmem:[%s2444_s5 + $0x88] sm:$0x3] }
  0x31   : > { %552 = vmatmul.mubr.f32.gmra.mrb[2].mxu0 %v2456_v51  ;;  %1874 = vmatmul.mubr.f32.gmra.mrb[2].mxu1 %v414_v9  ;;  %v331_v9 = vld [vmem:[%s3095_s1 + $0xe8] sm:$0xff] }
  0x32   : > { %2041 = vmatpush3.bf16.msra.mxu0 %v2040_v54  ;;  %556 = vmatprep.mubr.f32.mxu0 %v2603_v60  ;;  %v345_v54 = vld [vmem:[%s3095_s1 + $0x158] sm:$0xff] }
  0x33   : > { %2073 = vmatpush3.bf16.msra.mxu1 %v2070_v44  ;;  %2043 = vmatprep.subr.bf16.mxu0 %v2042_v61  ;;  %v311_v44 = vld [vmem:[%s3095_s1 + $0x48] sm:$0xff]  ;;  %v2086_v8 = vpack.c.bf16 %v345_v54, %v344_v53  ;;  %v965_v54 = vrot.slane %v1541_v45, 2 }
  0x34   : > { %2075 = vmatprep.subr.bf16.mxu1 %v2074_v4  ;;  %1876 = vmatprep.mubr.f32.mxu1 %v2643_v15  ;;  %v2052_v61 = vpack.c.bf16 %v311_v44, %v310_v43 }
  0x35   : > { %557 = vmatmul.mubr.f32.gmra.mrb[4].mxu0 %v2541_v28  ;;  %1877 = vmatmul.mubr.f32.gmra.mrb[4].mxu1 %v419_v33  ;;  %v245_v33 = vrot.slane %v2659_v23, 1  ;;  %v2813_v14 = vsel %vm273_vm1, %v2599_v59, %v965_v54 }
  0x36   : > { %2045 = vmatpush3.bf16.msra.mxu0 %v2044_v13  ;;  %561 = vmatprep.mubr.f32.mxu0 %v386_v18  ;;  %v347_v13 = vld [vmem:[%s3095_s1 + $0x168] sm:$0xff]  ;;  %v395_v18 = vrot.slane %v2671_v30, 1  ;;  %v2058_v30 = vpack.c.bf16 %v331_v9, %v330_v7 }
  0x37   : > { %2077 = vmatpush3.bf16.msra.mxu1 %v2074_v4  ;;  %2047 = vmatprep.subr.bf16.mxu0 %v2046_v19  ;;  %v313_v4 = vld [vmem:[%s3095_s1 + $0x58] sm:$0xff]  ;;  %v2756_v19 = vld [vmem:[%s3095_s1 + $0xf0] sm:$0xff]  ;;  %v2090_v31 = vpack.c.bf16 %v347_v13, %v346_v12  ;;  %v1565_v9 = vld [vmem:[%s3095_s1 + $0x388] sm:$0xff] }
  0x38   : > { %2079 = vmatprep.subr.bf16.mxu1 %v2078_v25  ;;  %1879 = vmatprep.mubr.f32.mxu1 %v2686_v37  ;;  %v2056_v20 = vpack.c.bf16 %v313_v4, %v312_v3  ;;  %v396_v38 = vsel %vm244_vm0, %v2731_v6, %v395_v18  ;;  %v972_v3 = vrot.slane %v2781_v47, 2  ;;  %v222_v12 = vld [vmem:[%s2444_s5 + $0x10] sm:$0x3] }
  0x39   : > { %562 = vmatmul.mubr.f32.gmra.mrb[6].mxu0 %v2544_v29  ;;  %1880 = vmatmul.mubr.f32.gmra.mrb[6].mxu1 %v424_v58 }
  0x3a   : > { %2049 = vmatpush3.bf16.msra.mxu0 %v2048_v36  ;;  %566 = vmatprep.mubr.f32.mxu0 %v2692_v41  ;;  %v1538_v36 = vld [vmem:[%s2444_s5 + $0x40] sm:$0x3] }
  0x3b   : > { %2081 = vmatpush3.bf16.msra.mxu1 %v2078_v25  ;;  %2051 = vmatprep.subr.bf16.mxu0 %v2050_v42  ;;  %v348_v25 = vld [vmem:[%s3095_s1 + $0x170] sm:$0xff]  ;;  %v2062_v42 = vpack.c.bf16 %v333_v21, %v2756_v19  ;;  %v960_v44 = vrot.slane %v1538_v36, 2  ;;  %v932_v53 = vrot.slane %v1538_v36, 1  ;;  %v1580_v19 = vld [vmem:[%s3095_s1 + $0x400] sm:$0xff] }
  0x3c   : > { %2083 = vmatprep.subr.bf16.mxu1 %v2082_v46  ;;  %1914 = vmatprep.mubr.f32.mxu1 %v276_v62  ;;  %v2094_v43 = vpack.c.bf16 %v349_v26, %v348_v25  ;;  %v2788_v62 = vld [vmem:[%s2444_s5 + $0x80] sm:$0xff]  ;;  %v975_v25 = vrot.slane %v1547_v5, 2  ;;  %v944_v26 = vrot.slane %v2781_v47, 1 }
  0x3d   : > { %567 = vmatmul.mubr.f32.gmra.mrb[8].mxu0 %v2588_v49  ;;  %v973_v4 = vrot.slane %v2788_v62, 2  ;;  %v2809_v13 = vsel %vm244_vm0, %v2569_v40, %v932_v53  ;;  %v945_v36 = vrot.slane %v2788_v62, 1  ;;  %v277_v53 = vrot.slane %v222_v12, 2 }
  0x3e   : > { %2053 = vmatpush3.bf16.msra.mxu0 %v2052_v61  ;;  %571 = vmatprep.mubr.f32.mxu0 %v391_v1  ;;  %v937_v61 = vrot.slane %v1541_v45, 1  ;;  %v317_v1 = vld [vmem:[%s3095_s1 + $0x78] sm:$0xff]  ;;  %v247_v45 = vsel %vm244_vm0, %v245_v33, %v246_v34  ;;  %v1566_v33 = vld [vmem:[%s3095_s1 + $0x390] sm:$0xff] }
  0x3f   : > { %2085 = vmatpush3.bf16.msra.mxu1 %v2082_v46  ;;  %2055 = vmatprep.subr.bf16.mxu0 %v2054_v2  ;;  %v1544_v46 = vld [vmem:[%s2444_s5 + $0x70] sm:$0x3]  ;;  %v2795_v2 = vsel %vm273_vm1, %v2557_v35, %v960_v44  ;;  %v2831_v21 = vsel %vm273_vm1, %v972_v3, %v973_v4  ;;  %v947_v44 = vrot.slane %v1547_v5, 1 }
  0x40   : > { %2087 = vmatprep.subr.bf16.mxu1 %v2086_v8  ;;  %v970_v58 = vrot.slane %v1544_v46, 2  ;;  %v942_v7 = vrot.slane %v1544_v46, 1  ;;  %v2821_v18 = vsel %vm244_vm0, %v2656_v22, %v937_v61  ;;  %v1582_v61 = vld [vmem:[%s3095_s1 + $0x410] sm:$0xff] }
  0x41   : > { %572 = vmatmul.mubr.f32.gmra.mrb[10].mxu0 %v2591_v52  ;;  %v2858_v54 = vsel %vm244_vm0, %v945_v36, %v947_v44  ;;  %v1550_v5 = vld [vmem:[%s3095_s1 + $0x310] sm:$0xff] }
  0x42   : > { %2057 = vmatpush3.bf16.msra.mxu0 %v2056_v20  ;;  %576 = vmatprep.mubr.f32.mxu0 %v2769_v27  ;;  %v2817_v16 = vsel %vm273_vm1, %v2647_v17, %v970_v58  ;;  %v1581_v20 = vld [vmem:[%s3095_s1 + $0x408] sm:$0xff]  ;;  %v2835_v17 = vsel %vm244_vm0, %v2731_v6, %v942_v7  ;;  %v1548_v6 = vld [vmem:[%s3095_s1 + $0x300] sm:$0xff]  ;;  %v1567_v58 = vld [vmem:[%s3095_s1 + $0x398] sm:$0xff] }
  0x43   : > { %2089 = vmatpush3.bf16.msra.mxu1 %v2086_v8  ;;  %2059 = vmatprep.subr.bf16.mxu0 %v2058_v30  ;;  %v1564_v8 = vld [vmem:[%s3095_s1 + $0x380] sm:$0xff]  ;;  %v2064_v30 = vpack.c.bf16 %v317_v1, %v316_v48  ;;  %v2855_v48 = vsel %vm244_vm0, %v944_v26, %v945_v36  ;;  %v1583_v1 = vld [vmem:[%s3095_s1 + $0x418] sm:$0xff]  ;;  %v1553_v36 = vld [vmem:[%s3095_s1 + $0x328] sm:$0xff] }
  0x44   : > { %2091 = vmatprep.subr.bf16.mxu1 %v2090_v31  ;;  %v2098_v46 = vpack.c.bf16 %v1565_v9, %v1564_v8  ;;  %v1551_v7 = vld [vmem:[%s3095_s1 + $0x318] sm:$0xff]  ;;  %v2102_v9 = vpack.c.bf16 %v1567_v58, %v1566_v33 }
  0x45   : > { %577 = vmatmul.mubr.f32.gmra.mrb[12].mxu0 %v2631_v10  ;;  %v2104_v26 = vpack.c.bf16 %v1551_v7, %v1550_v5  ;;  %v1589_v5 = vld [vmem:[%s3095_s1 + $0x448] sm:$0xff] }
  0x46   : > { %2061 = vmatpush3.bf16.msra.mxu0 %v2060_v32  ;;  %581 = vmatprep.mubr.f32.mxu0 %v396_v38  ;;  %v1549_v32 = vld [vmem:[%s3095_s1 + $0x308] sm:$0xff]  ;;  %v2849_v38 = vsel %vm273_vm1, %v973_v4, %v975_v25  ;;  %v278_v4 = vsel %vm273_vm1, %v275_v39, %v277_v53  ;;  %v1571_v53 = vld [vmem:[%s3095_s1 + $0x3b8] sm:$0xff] }
  0x47   : > { %2093 = vmatpush3.bf16.msra.mxu1 %v2090_v31  ;;  %2063 = vmatprep.subr.bf16.mxu0 %v2062_v42  ;;  %v2130_v31 = vpack.c.bf16 %v1581_v20, %v1580_v19  ;;  %v248_v42 = vrot.slane %v222_v12, 1  ;;  %v2100_v3 = vpack.c.bf16 %v1549_v32, %v1548_v6  ;;  %v1568_v12 = vld [vmem:[%s3095_s1 + $0x3a0] sm:$0xff]  ;;  %v1569_v39 = vld [vmem:[%s3095_s1 + $0x3a8] sm:$0xff]  ;;  %v1586_v32 = vld [vmem:[%s3095_s1 + $0x430] sm:$0xff] }
  0x48   : > { %2095 = vmatprep.subr.bf16.mxu1 %v2094_v43  ;;  %v225_v19 = vld [vmem:[%s2444_s5 + $0x28] sm:$0x3]  ;;  %v1584_v20 = vld [vmem:[%s3095_s1 + $0x420] sm:$0xff] }
  0x49   : > { %582 = vmatmul.mubr.f32.gmra.mrb[14].mxu0 %v2634_v11  ;;  %v249_v8 = vsel %vm244_vm0, %v246_v34, %v248_v42  ;;  %v1585_v34 = vld [vmem:[%s3095_s1 + $0x428] sm:$0xff]  ;;  %v282_v25 = vrot.slane %v225_v19, 2  ;;  %v253_v44 = vrot.slane %v225_v19, 1  ;;  %v228_v6 = vld [vmem:[%s2444_s5 + $0x40] sm:$0x3] }
  0x4a   : > { %2065 = vmatpush3.bf16.msra.mxu0 %v2064_v30  ;;  %756 = vmatprep.mubr.f32.mxu0 %v247_v45  ;;  %v2106_v30 = vpack.c.bf16 %v1569_v39, %v1568_v12  ;;  %v2138_v45 = vpack.c.bf16 %v1585_v34, %v1584_v20  ;;  %v287_v33 = vrot.slane %v228_v6, 2  ;;  %v1557_v12 = vld [vmem:[%s3095_s1 + $0x348] sm:$0xff]  ;;  %v258_v39 = vrot.slane %v228_v6, 1  ;;  %v1575_v20 = vld [vmem:[%s3095_s1 + $0x3d8] sm:$0xff]  ;;  %v1590_v34 = vld [vmem:[%s3095_s1 + $0x450] sm:$0xff] }
  0x4b   : > { %2097 = vmatpush3.bf16.msra.mxu1 %v2094_v43  ;;  %2099 = vmatprep.subr.bf16.mxu0 %v2098_v46  ;;  %v2134_v43 = vpack.c.bf16 %v1583_v1, %v1582_v61  ;;  %v1570_v46 = vld [vmem:[%s3095_s1 + $0x3b0] sm:$0xff]  ;;  %v283_v42 = vsel %vm273_vm1, %v2470_v57, %v282_v25  ;;  %v2921_v61 = vld [vmem:[%s2444_s5 + $0x58] sm:$0x3] }
  0x4c   : > { %2131 = vmatprep.subr.bf16.mxu1 %v2130_v31  ;;  %v2110_v1 = vpack.c.bf16 %v1571_v53, %v1570_v46  ;;  %v1555_v57 = vld [vmem:[%s3095_s1 + $0x338] sm:$0xff]  ;;  %v288_v7 = vsel %vm273_vm1, %v2557_v35, %v287_v33  ;;  %v1574_v35 = vld [vmem:[%s3095_s1 + $0x3d0] sm:$0xff]  ;;  %v1577_v46 = vld [vmem:[%s3095_s1 + $0x3e8] sm:$0xff]  ;;  %v263_v33 = vrot.slane %v2921_v61, 1 }
  0x4d   : > { %757 = vmatmul.mubr.f32.vlgmr.msra.gmra.mrb[16].mxu0 %v2659_v23  ;;  %v1552_v23 = vld [vmem:[%s3095_s1 + $0x320] sm:$0xff]  ;;  %v1591_v25 = vld [vmem:[%s3095_s1 + $0x458] sm:$0xff]  ;;  %v1593_v53 = vld [vmem:[%s3095_s1 + $0x468] sm:$0xff] }
  0x4e   : > { %1915 = vmatmul.mubr.f32.vlgmr.msra.gmra.mrb[0].mxu1 %v278_v4  ;;  %2101 = vmatpush3.bf16.msra.mxu0 %v2100_v3  ;;  %v2108_v58 = vpack.c.bf16 %v1553_v36, %v1552_v23  ;;  %v1573_v4 = vld [vmem:[%s3095_s1 + $0x3c8] sm:$0xff]  ;;  %v2118_v23 = vpack.c.bf16 %v1575_v20, %v1574_v35  ;;  %v1558_v36 = vld [vmem:[%s3095_s1 + $0x350] sm:$0xff] }
  0x4f   : > { %2133 = vmatpush3.bf16.msra.mxu1 %v2130_v31  ;;  %761 = vmatprep.mubr.f32.mxu0 %v249_v8  ;;  %v1587_v31 = vld [vmem:[%s3095_s1 + $0x438] sm:$0xff]  ;;  %v292_v8 = vrot.slane %v2921_v61, 2 }
  0x50   : > { %2103 = vmatprep.subr.bf16.mxu0 %v2102_v9  ;;  %2135 = vmatprep.subr.bf16.mxu1 %v2134_v43  ;;  %v2142_v3 = vpack.c.bf16 %v1587_v31, %v1586_v32  ;;  %v1560_v31 = vld [vmem:[%s3095_s1 + $0x360] sm:$0xff]  ;;  %v1595_v61 = vld [vmem:[%s3095_s1 + $0x478] sm:$0xff] }
  0x51   : > { %762 = vmatmul.mubr.f32.gmra.mrb[18].mxu0 %v2662_v24  ;;  %1917 = vmatprep.mubr.f32.mxu1 %v2490_v0  ;;  %v254_v24 = vsel %vm244_vm0, %v2466_v55, %v253_v44  ;;  %v1554_v0 = vld [vmem:[%s3095_s1 + $0x330] sm:$0xff]  ;;  %v1588_v55 = vld [vmem:[%s3095_s1 + $0x440] sm:$0xff]  ;;  %v1559_v44 = vld [vmem:[%s3095_s1 + $0x358] sm:$0xff] }
  0x52   : > { %2105 = vmatpush3.bf16.msra.mxu0 %v2104_v26  ;;  %766 = vmatprep.mubr.f32.mxu0 %v2486_v63  ;;  %v1572_v63 = vld [vmem:[%s3095_s1 + $0x3c0] sm:$0xff]  ;;  %v2112_v9 = vpack.c.bf16 %v1555_v57, %v1554_v0  ;;  %v2146_v19 = vpack.c.bf16 %v1589_v5, %v1588_v55  ;;  %v293_v26 = vsel %vm273_vm1, %v2599_v59, %v292_v8 }
  0x53   : > { %2137 = vmatpush3.bf16.msra.mxu1 %v2134_v43  ;;  %2107 = vmatprep.subr.bf16.mxu0 %v2106_v30  ;;  %v1556_v43 = vld [vmem:[%s3095_s1 + $0x340] sm:$0xff]  ;;  %v2150_v59 = vpack.c.bf16 %v1591_v25, %v1590_v34  ;;  %v2120_v6 = vpack.c.bf16 %v1559_v44, %v1558_v36  ;;  %v264_v57 = vsel %vm244_vm0, %v2656_v22, %v263_v33 }
  0x54   : > { %2139 = vmatprep.subr.bf16.mxu1 %v2138_v45  ;;  %1918 = vmatmul.mubr.f32.gmra.mrb[2].mxu1 %v283_v42  ;;  %v2116_v30 = vpack.c.bf16 %v1557_v12, %v1556_v43  ;;  %v1561_v42 = vld [vmem:[%s3095_s1 + $0x368] sm:$0xff] }
  0x55   : > { %767 = vmatmul.mubr.f32.gmra.mrb[20].mxu0 %v2453_v50  ;;  %1920 = vmatprep.mubr.f32.mxu1 %v2595_v56  ;;  %v2114_v50 = vpack.c.bf16 %v1573_v4, %v1572_v63  ;;  %v2124_v0 = vpack.c.bf16 %v1561_v42, %v1560_v31  ;;  %v1562_v63 = vld [vmem:[%s3095_s1 + $0x370] sm:$0xff]  ;;  %v1563_v4 = vld [vmem:[%s3095_s1 + $0x378] sm:$0xff] }
  0x56   : > { %2109 = vmatpush3.bf16.msra.mxu0 %v2108_v58  ;;  %771 = vmatprep.mubr.f32.mxu0 %v254_v24  ;;  %v1579_v24 = vld [vmem:[%s3095_s1 + $0x3f8] sm:$0xff]  ;;  %v2128_v5 = vpack.c.bf16 %v1563_v4, %v1562_v63 }
  0x57   : > { %2141 = vmatpush3.bf16.msra.mxu1 %v2138_v45  ;;  %2111 = vmatprep.subr.bf16.mxu0 %v2110_v1  ;;  %v1576_v45 = vld [vmem:[%s3095_s1 + $0x3e0] sm:$0xff]  ;;  %v1594_v1 = vld [vmem:[%s3095_s1 + $0x470] sm:$0xff] }
  0x58   : > { %2143 = vmatprep.subr.bf16.mxu1 %v2142_v3  ;;  %1921 = vmatmul.mubr.f32.gmra.mrb[4].mxu1 %v288_v7  ;;  %v2122_v32 = vpack.c.bf16 %v1577_v46, %v1576_v45  ;;  %v2158_v55 = vpack.c.bf16 %v1595_v61, %v1594_v1 }
  0x59   : > { %772 = vmatmul.mubr.f32.gmra.mrb[22].mxu0 %v2456_v51  ;;  %1923 = vmatprep.mubr.f32.mxu1 %v2643_v15  ;;  %v259_v51 = vsel %vm244_vm0, %v2569_v40, %v258_v39  ;;  %v1592_v40 = vld [vmem:[%s3095_s1 + $0x460] sm:$0xff] }
  0x5a   : > { %2113 = vmatpush3.bf16.msra.mxu0 %v2112_v9  ;;  %776 = vmatprep.mubr.f32.mxu0 %v2603_v60  ;;  %v2154_v58 = vpack.c.bf16 %v1593_v53, %v1592_v40 }
  0x5b   : > { %2145 = vmatpush3.bf16.msra.mxu1 %v2142_v3  ;;  %2115 = vmatprep.subr.bf16.mxu0 %v2114_v50 }
  0x5c   : > { %2147 = vmatprep.subr.bf16.mxu1 %v2146_v19  ;;  %1924 = vmatmul.mubr.f32.gmra.mrb[6].mxu1 %v293_v26 }
  0x5d   : > { %777 = vmatmul.mubr.f32.gmra.mrb[24].mxu0 %v2541_v28  ;;  %1958 = vmatprep.mubr.f32.mxu1 %v2595_v56  ;;  %v1578_v56 = vld [vmem:[%s3095_s1 + $0x3f0] sm:$0xff] }
  0x5e   : > { %2117 = vmatpush3.bf16.msra.mxu0 %v2116_v30  ;;  %781 = vmatprep.mubr.f32.mxu0 %v259_v51  ;;  %v2126_v3 = vpack.c.bf16 %v1579_v24, %v1578_v56 }
  0x5f   : > { %2149 = vmatpush3.bf16.msra.mxu1 %v2146_v19  ;;  %2119 = vmatprep.subr.bf16.mxu0 %v2118_v23 }
  0x60   : > { %2151 = vmatprep.subr.bf16.mxu1 %v2150_v59 }
  0x61   : > { %782 = vmatmul.mubr.f32.gmra.mrb[26].mxu0 %v2544_v29 }
  0x62   : > { %2121 = vmatpush3.bf16.msra.mxu0 %v2120_v6  ;;  %786 = vmatprep.mubr.f32.mxu0 %v2692_v41 }
  0x63   : > { %2153 = vmatpush3.bf16.msra.mxu1 %v2150_v59  ;;  %2123 = vmatprep.subr.bf16.mxu0 %v2122_v32 }
  0x64   : > { %2155 = vmatprep.subr.bf16.mxu1 %v2154_v58 }
  0x65   : > { %787 = vmatmul.mubr.f32.gmra.mrb[28].mxu0 %v2588_v49 }
  0x66   : > { %2125 = vmatpush3.bf16.msra.mxu0 %v2124_v0  ;;  %791 = vmatprep.mubr.f32.mxu0 %v264_v57 }
  0x67   : > { %2157 = vmatpush3.bf16.msra.mxu1 %v2154_v58  ;;  %2127 = vmatprep.subr.bf16.mxu0 %v2126_v3 }
  0x68   : > { %2159 = vmatprep.subr.bf16.mxu1 %v2158_v55 }
  0x69   : > { %792 = vmatmul.mubr.f32.gmra.mrb[30].mxu0 %v2591_v52 }
  0x6a   : > { %2129 = vmatpush3.bf16.msra.mxu0 %v2128_v5  ;;  %1098 = vmatprep.mubr.f32.mxu0 %v2603_v60 }
  0x6b   : > { %2161 = vmatpush3.bf16.msra.mxu1 %v2158_v55 }
  0x6d   : > { %1099 = vmatmul.mubr.f32.vlgmr.msra.gmra.mrb[32].mxu0 %v2541_v28 }
  0x6e   : > { %1959 = vmatmul.mubr.f32.vlgmr.msra.gmra.mrb[0].mxu1 %v2795_v2  ;;  %1103 = vmatprep.mubr.f32.mxu0 %v2809_v13 }
  0x6f   : > { %1961 = vmatprep.mubr.f32.mxu1 %v2643_v15 }
  0x71   : > { %1104 = vmatmul.mubr.f32.gmra.mrb[34].mxu0 %v2544_v29 }
  0x72   : > { %1962 = vmatmul.mubr.f32.gmra.mrb[2].mxu1 %v2813_v14  ;;  %1108 = vmatprep.mubr.f32.mxu0 %v2692_v41 }
  0x73   : > { %1964 = vmatprep.mubr.f32.mxu1 %v2686_v37 }
  0x75   : > { %1109 = vmatmul.mubr.f32.gmra.mrb[36].mxu0 %v2588_v49 }
  0x76   : > { %1965 = vmatmul.mubr.f32.gmra.mrb[4].mxu1 %v2817_v16  ;;  %1113 = vmatprep.mubr.f32.mxu0 %v2821_v18 }
  0x77   : > { %1967 = vmatprep.mubr.f32.mxu1 %v2831_v21 }
  0x79   : > { %1114 = vmatmul.mubr.f32.gmra.mrb[38].mxu0 %v2591_v52 }
  0x7a   : > { %1968 = vmatmul.mubr.f32.gmra.mrb[6].mxu1 %v2849_v38  ;;  %1118 = vmatprep.mubr.f32.mxu0 %v2769_v27 }
  0x7d   : > { %1119 = vmatmul.mubr.f32.gmra.mrb[40].mxu0 %v2631_v10 }
  0x7e   : > { %1123 = vmatprep.mubr.f32.mxu0 %v2835_v17 }
  0x81   : > { %1124 = vmatmul.mubr.f32.gmra.mrb[42].mxu0 %v2634_v11 }
  0x82   : > { %1128 = vmatprep.mubr.f32.mxu0 %v2855_v48 }
  0x85   : > { %1129 = vmatmul.mubr.f32.gmra.mrb[44].mxu0 %v2781_v47 }
  0x86   : > { %1133 = vmatprep.mubr.f32.mxu0 %v2858_v54 }
  0x89   : > { %1134 = vmatmul.mubr.f32.gmra.mrb[46].mxu0 %v2788_v62 }
 0x100   : > { %v1630_v28 = vpop.f32.mrb[0].mxu0 }
 0x101   : > { %v1631_v29 = vpop.f32.mrb[1].mxu0 }
 0x102   : > { %v1632_v49 = vadd.f32 %v1631_v29, %v1630_v28 }
 0x104   : > { %v1633_v52 = vpop.f32.mrb[2].mxu0 }
 0x105   : > { %v1634_v60 = vpop.f32.mrb[3].mxu0 }
 0x106   : > { %v1635_v15 = vadd.f32 %v1634_v60, %v1633_v52 }
 0x108   : > { %v1636_v22 = vpop.f32.mrb[4].mxu0 }
 0x109   : > { %v1637_v10 = vpop.f32.mrb[5].mxu0 }
 0x10a   : > { %v1638_v37 = vadd.f32 %v1637_v10, %v1636_v22 }
 0x10c   : > { %v1639_v41 = vpop.f32.mrb[6].mxu0 }
 0x10d   : > { %v1640_v27 = vpop.f32.mrb[7].mxu0 }
 0x10e   : > { %v1641_v11 = vadd.f32 %v1640_v27, %v1639_v41 }
 0x110   : > { %v1642_v2 = vpop.f32.mrb[8].mxu0 }
 0x111   : > { %v1643_v13 = vpop.f32.mrb[9].mxu0 }
 0x112   : > { %v1644_v14 = vadd.f32 %v1643_v13, %v1642_v2 }
 0x114   : > { %v1645_v47 = vpop.f32.mrb[10].mxu0 }
 0x115   : > { %v1646_v16 = vpop.f32.mrb[11].mxu0 }
 0x116   : > { %v1647_v18 = vadd.f32 %v1646_v16, %v1645_v47 }
 0x118   : > { %v1648_v21 = vpop.f32.mrb[12].mxu0 }
 0x119   : > { %v1649_v62 = vpop.f32.mrb[13].mxu0 }
 0x11a   : > { %v1650_v17 = vadd.f32 %v1649_v62, %v1648_v21 }
 0x11c   : > { %v1651_v38 = vpop.f32.mrb[14].mxu0 }
 0x11d   : > { %v1652_v48 = vpop.f32.mrb[15].mxu0 }
 0x11e   : > { %v1653_v54 = vadd.f32 %v1652_v48, %v1651_v38 }
 0x120   : > { %v1710_v7 = vpop.f32.mrb[16].mxu0 }
 0x121   : > { %v1711_v8 = vpop.f32.mrb[17].mxu0 }
 0x122   : > { %v1712_v9 = vadd.f32 %v1711_v8, %v1710_v7 }
 0x124   : > { %v2165_v50 = vadd.f32 %v1712_v9, %v1632_v49  ;;  %v1713_v43 = vpop.f32.mrb[18].mxu0 }
 0x125   : > { %v1714_v12 = vpop.f32.mrb[19].mxu0 }
 0x126   : > { %v1715_v39 = vadd.f32 %v1714_v12, %v1713_v43 }
 0x128   : > { %v2162_v19 = vadd.f32 %v1715_v39, %v1635_v15  ;;  %v1716_v35 = vpop.f32.mrb[20].mxu0 }
 0x129   : > { %v1717_v20 = vpop.f32.mrb[21].mxu0 }
 0x12a   : > { %v1718_v34 = vadd.f32 %v1717_v20, %v1716_v35 }
 0x12c   : > { %v2171_v25 = vadd.f32 %v1718_v34, %v1638_v37  ;;  %v1719_v26 = vpop.f32.mrb[22].mxu0 }
 0x12d   : > { %v1720_v30 = vpop.f32.mrb[23].mxu0 }
 0x12e   : > { %v1721_v51 = vadd.f32 %v1720_v30, %v1719_v26 }
 0x130   : > { %v2168_v23 = vadd.f32 %v1721_v51, %v1641_v11  ;;  %v1722_v36 = vpop.f32.mrb[24].mxu0 }
 0x131   : > { %v1723_v44 = vpop.f32.mrb[25].mxu0 }
 0x132   : > { %v1724_v59 = vadd.f32 %v1723_v44, %v1722_v36 }
 0x134   : > { %v3048_v45 = vadd.f32 %v1724_v59, %v1644_v14  ;;  %v1725_v46 = vpop.f32.mrb[26].mxu0 }
 0x135   : > { %v1726_v40 = vpop.f32.mrb[27].mxu0 }
 0x136   : > { %v1727_v53 = vadd.f32 %v1726_v40, %v1725_v46 }
 0x138   : > { %v3050_v6 = vadd.f32 %v1727_v53, %v1647_v18  ;;  %v1728_v32 = vpop.f32.mrb[28].mxu0 }
 0x139   : > { %v1729_v31 = vpop.f32.mrb[29].mxu0 }
 0x13a   : > { %v1730_v42 = vadd.f32 %v1729_v31, %v1728_v32 }
 0x13c   : > { %v3052_v33 = vadd.f32 %v1730_v42, %v1650_v17  ;;  %v1731_v58 = vpop.f32.mrb[30].mxu0 }
 0x13d   : > { %v1732_v56 = vpop.f32.mrb[31].mxu0 }
 0x13e   : > { %v1733_v24 = vadd.f32 %v1732_v56, %v1731_v58 }
 0x140   : > { %v3055_v1 = vadd.f32 %v1733_v24, %v1653_v54  ;;  %v1790_v61 = vpop.f32.mrb[32].mxu0 }
 0x141   : > { %v1960_v0 = vpop.f32.mrb[0].mxu1  ;;  %v1791_v57 = vpop.f32.mrb[33].mxu0 }
 0x142   : > { %v1792_v3 = vadd.f32 %v1791_v57, %v1790_v61  ;;  %v1205_v63 = vpop.f32.mrb[1].mxu1 }
 0x144   : > { %v2166_v4 = vadd.f32 %v2165_v50, %v1792_v3  ;;  %v1793_v55 = vpop.f32.mrb[34].mxu0 }
 0x145   : > { %v1963_v5 = vpop.f32.mrb[2].mxu1  ;;  %v1794_v28 = vpop.f32.mrb[35].mxu0 }
 0x146   : > { %v2167_v29 = vadd.f32 %v2166_v4, %v1205_v63  ;;  %v1795_v49 = vadd.f32 %v1794_v28, %v1793_v55  ;;  %v1215_v52 = vpop.f32.mrb[3].mxu1 }
 0x148   : > { %1252 = vst [vmem:[%s3060_s26] sm:$0xff] %v2167_v29  ;;  %v2163_v60 = vadd.f32 %v2162_v19, %v1795_v49  ;;  %v1796_v15 = vpop.f32.mrb[36].mxu0  ;;  %v1274_v11 = vmul.f32 %v2167_v29, %v2167_v29 }
 0x149   : > { %v1966_v22 = vpop.f32.mrb[4].mxu1  ;;  %v1797_v10 = vpop.f32.mrb[37].mxu0 }
 0x14a   : > { %v2164_v37 = vadd.f32 %v2163_v60, %v1960_v0  ;;  %v1798_v41 = vadd.f32 %v1797_v10, %v1796_v15  ;;  %v1225_v27 = vpop.f32.mrb[5].mxu1  ;;  %v2284_v60 = vmov 1966171168  }
 0x14b   : > { %v1300_v15 = vunpack.c.l.s4 %v2284_v60 }
 0x14c   : > { %1253 = vst [vmem:[%s3060_s26 + $0x8] sm:$0xff] %v2164_v37  ;;  %v1260_v2 = vadd.f32 %v2167_v29, %v2164_v37  ;;  %v1275_v13 = vmul.f32 %v2164_v37, %v2164_v37  ;;  %v2172_v14 = vadd.f32 %v2171_v25, %v1798_v41  ;;  %v1799_v47 = vpop.f32.mrb[38].mxu0 }
 0x14d   : > { %v1969_v16 = vpop.f32.mrb[6].mxu1  ;;  %v1800_v18 = vpop.f32.mrb[39].mxu0 }
 0x14e   : > { %v1282_v21 = vadd.f32 %v1275_v13, %v1274_v11  ;;  %v2173_v62 = vadd.f32 %v2172_v14, %v1215_v52  ;;  %v1801_v17 = vadd.f32 %v1800_v18, %v1799_v47  ;;  %v1235_v38 = vpop.f32.mrb[7].mxu1 }
 0x150   : > { %1254 = vst [vmem:[%s3060_s26 + $0x10] sm:$0xff] %v2173_v62  ;;  %v1261_v48 = vadd.f32 %v2173_v62, %v1260_v2  ;;  %v1276_v54 = vmul.f32 %v2173_v62, %v2173_v62  ;;  %v2169_v7 = vadd.f32 %v2168_v23, %v1801_v17  ;;  %v1802_v8 = vpop.f32.mrb[40].mxu0 }
 0x151   : > { %v1803_v9 = vpop.f32.mrb[41].mxu0 }
 0x152   : > { %v1283_v50 = vadd.f32 %v1282_v21, %v1276_v54  ;;  %v2170_v43 = vadd.f32 %v2169_v7, %v1963_v5  ;;  %v1804_v12 = vadd.f32 %v1803_v9, %v1802_v8 }
 0x154   : > { %1255 = vst [vmem:[%s3060_s26 + $0x18] sm:$0xff] %v2170_v43  ;;  %v1262_v39 = vadd.f32 %v2170_v43, %v1261_v48  ;;  %v1277_v19 = vmul.f32 %v2170_v43, %v2170_v43  ;;  %v2178_v35 = vadd.f32 %v3048_v45, %v1804_v12  ;;  %v1805_v20 = vpop.f32.mrb[42].mxu0 }
 0x155   : > { %v1806_v34 = vpop.f32.mrb[43].mxu0 }
 0x156   : > { %v1284_v25 = vadd.f32 %v1283_v50, %v1277_v19  ;;  %v2179_v26 = vadd.f32 %v2178_v35, %v1225_v27  ;;  %v1807_v30 = vadd.f32 %v1806_v34, %v1805_v20  ;;  %v1301_v27 = vunpack.c.0.s8 %v1300_v15 }
 0x158   : > { %1256 = vst [vmem:[%s3060_s26 + $0x20] sm:$0xff] %v2179_v26  ;;  %v1263_v51 = vadd.f32 %v2179_v26, %v1262_v39  ;;  %v1278_v36 = vmul.f32 %v2179_v26, %v2179_v26  ;;  %v2175_v23 = vadd.f32 %v3050_v6, %v1807_v30  ;;  %v1808_v44 = vpop.f32.mrb[44].mxu0 }
 0x159   : > { %v1809_v59 = vpop.f32.mrb[45].mxu0 }
 0x15a   : > { %v1285_v46 = vadd.f32 %v1284_v25, %v1278_v36  ;;  %v2176_v40 = vadd.f32 %v2175_v23, %v1966_v22  ;;  %v1810_v53 = vadd.f32 %v1809_v59, %v1808_v44  ;;  %v1302_v22 = vlaneseq }
 0x15c   : > { %1257 = vst [vmem:[%s3060_s26 + $0x28] sm:$0xff] %v2176_v40  ;;  %v1264_v32 = vadd.f32 %v2176_v40, %v1263_v51  ;;  %v1279_v45 = vmul.f32 %v2176_v40, %v2176_v40  ;;  %v2184_v31 = vadd.f32 %v3052_v33, %v1810_v53  ;;  %v1811_v42 = vpop.f32.mrb[46].mxu0  ;;  %v1303_v11 = vshrl.u32 %v1302_v22, 7 }
 0x15d   : > { %v1812_v58 = vpop.f32.mrb[47].mxu0  ;;  %vm1316_vm2 = vcmp.lt.s32.totalorder %v1302_v22, 256 }
 0x15e   : > { %v1286_v56 = vadd.f32 %v1285_v46, %v1279_v45  ;;  %v2185_v24 = vadd.f32 %v2184_v31, %v1235_v38  ;;  %v1813_v61 = vadd.f32 %v1812_v58, %v1811_v42  ;;  %v1304_v47 = vsub.s32 %v1301_v27, %v1303_v11 }
 0x160   : > { %1258 = vst [vmem:[%s3060_s26 + $0x30] sm:$0xff] %v2185_v24  ;;  %v1265_v6 = vadd.f32 %v2185_v24, %v1264_v32  ;;  %v1280_v0 = vmul.f32 %v2185_v24, %v2185_v24  ;;  %v2181_v57 = vadd.f32 %v3055_v1, %v1813_v61 }
 0x162   : > { %v1287_v3 = vadd.f32 %v1286_v56, %v1280_v0  ;;  %v2182_v63 = vadd.f32 %v2181_v57, %v1969_v16 }
 0x164   : > { %1259 = vst [vmem:[%s3060_s26 + $0x38] sm:$0xff] %v2182_v63  ;;  %v1266_v4 = vadd.f32 %v2182_v63, %v1265_v6  ;;  %v1281_v55 = vmul.f32 %v2182_v63, %v2182_v63 }
 0x166   : > { %v1267_v5 = vrot.slane %v1266_v4, 4  ;;  %v1288_v28 = vadd.f32 %v1287_v3, %v1281_v55 }
 0x168   : > { %v1268_v33 = vadd.f32 %v1267_v5, %v1266_v4  ;;  %v1289_v29 = vrot.slane %v1288_v28, 4 }
 0x16a   : > { %v1269_v49 = vrot.slane %v1268_v33, 2  ;;  %v1290_v52 = vadd.f32 %v1289_v29, %v1288_v28 }
 0x16c   : > { %v1270_v10 = vadd.f32 %v1269_v49, %v1268_v33  ;;  %v1291_v37 = vrot.slane %v1290_v52, 2 }
 0x16e   : > { %v1271_v1 = vrot.slane %v1270_v10, 1  ;;  %v1292_v41 = vadd.f32 %v1291_v37, %v1290_v52 }
 0x170   : > { %v1293_v2 = vrot.slane %v1292_v41, 1  ;;  %v1272_v13 = vadd.f32 %v1271_v1, %v1270_v10 }
 0x172   : > { %v1294_v14 = vadd.f32 %v1293_v2, %v1292_v41 }
 0x174   : > { %v1298_v16 = vcombine.low %v1272_v13, %v1294_v14 }
 0x176   : > { %v1305_v18 = vrot.slane %v1298_v16, %v1304_v47 }
 0x178   : > { %v1312_v21 = vrot.slane %v1305_v18, %v1304_v47 }
 0x17a   : > { %1318 = vst.msk [vmem:[%s214_s28] sm:$0x3] %vm1316_vm2, %v1312_v21 }
 0x17b PF: > { %s14_s16 = sadd.s32 1, %s2282_s16   ;;  %s3098_s12 = smov %s2274_s14 }
 0x17c   : > { %p11_p8 = scmp.ge.s32.totalorder %s14_s16, 10   ;;  %s3099_s13 = smov %s2278_s15 }
 0x17d   : > { %s3100_s14 = smov %s3103_s17  ;;  %s3101_s15 = smov %s3107_s18 }
 0x17e   :  { %13 = sbr.rel (!%p11_p8) target bundleno = 3 (0x3), region = 75 }

</bundles_post_ra>
